<compile_context>
chip_gen: v6e
topology: v6e:2x2x1
jax: 0.10.0
libtpu: 0.0.40
codegen_flags: <defaults>
</compile_context>

<pallas_src>
import functools

import jax
import jax.numpy as jnp
from jax.experimental import pallas as pl
from jax.experimental.pallas import tpu as pltpu


def _round_up(x, m):
    return (x + m - 1) // m * m


def _lstm_kernel(x_ref, wih_ref, whh_ref, b_ref, wlin_ref, blin_ref,
                 y_ref, gx_scr, *, seq_len, b_pad, h_pad, apply_linear):
    # ---- hoisted input projection: one MXU matmul covering all timesteps ----
    # x_ref: (T*Bp, IN) time-major rows -> gx_scr: (T*Bp, 4*Hp)
    gx_scr[...] = (jnp.dot(x_ref[...], wih_ref[...],
                           preferred_element_type=jnp.float32)
                   + b_ref[...])

    whh = whh_ref[...]                                     # (Hp, 4*Hp) resident

    def step(t, carry):
        h, c = carry
        row = pl.multiple_of(t * b_pad, b_pad)             # sublane-aligned start
        gates = gx_scr[pl.ds(row, b_pad), :] + jnp.dot(
            h, whh, preferred_element_type=jnp.float32)    # (Bp, 4*Hp)
        # lane-aligned (128-wide) gate slices, PyTorch gate order i, f, g, o
        i_g = jax.nn.sigmoid(gates[:, 0 * h_pad:1 * h_pad])
        f_g = jax.nn.sigmoid(gates[:, 1 * h_pad:2 * h_pad])
        g_g = jnp.tanh(gates[:, 2 * h_pad:3 * h_pad])
        o_g = jax.nn.sigmoid(gates[:, 3 * h_pad:4 * h_pad])
        c_new = f_g * c + i_g * g_g
        h_new = o_g * jnp.tanh(c_new)
        return (h_new, c_new)

    h0 = jnp.zeros((b_pad, h_pad), jnp.float32)
    c0 = jnp.zeros((b_pad, h_pad), jnp.float32)
    h_fin, _ = jax.lax.fori_loop(0, seq_len, step, (h0, c0), unroll=True)

    # dropout(p=0.2) is identity at inference time
    if apply_linear:
        y = jnp.dot(h_fin, wlin_ref[...],
                    preferred_element_type=jnp.float32) + blin_ref[...]
    else:
        y = h_fin
    y_ref[...] = y.astype(y_ref.dtype)                     # lane-dense store


def text_subnet_forward(x_btf, params, hidden_size, out_size):
    """x_btf: (B, T, IN) float32, batch-first like the PyTorch module."""
    B, T, IN = x_btf.shape
    H = hidden_size
    apply_linear = (hidden_size == out_size)
    OUT = out_size if apply_linear else H

    B_pad = _round_up(max(B, 8), 8)       # f32 sublane multiple
    H_pad = _round_up(H, 128)             # lane multiple -> aligned gate slices
    OUT_pad = _round_up(OUT, 128)         # lane-dense output store
    f32 = jnp.float32

    # Pad batch to Bp, go time-major, collapse (T, Bp) into matmul rows.
    x_p = jnp.pad(x_btf.astype(f32), ((0, B_pad - B), (0, 0), (0, 0)))
    x_rows = jnp.transpose(x_p, (1, 0, 2)).reshape(T * B_pad, IN)

    # Zero-pad each gate block's hidden dim H -> H_pad (keeps padded units inert).
    def pad_gates(w):                                      # (..., 4*H) -> (..., 4*H_pad)
        lead = w.shape[:-1]
        w4 = w.reshape(lead + (4, H))
        w4 = jnp.pad(w4, [(0, 0)] * len(lead) + [(0, 0), (0, H_pad - H)])
        return w4.reshape(lead + (4 * H_pad,)).astype(f32)

    w_ih = pad_gates(params["w_ih"])                                   # (IN, 4*Hp)
    w_hh = jnp.pad(pad_gates(params["w_hh"]), ((0, H_pad - H), (0, 0)))  # (Hp, 4*Hp)
    bias = pad_gates(params["bias"])                                   # (1, 4*Hp)

    if apply_linear:
        w_lin = jnp.pad(params["w_lin"].astype(f32),
                        ((0, H_pad - H), (0, OUT_pad - OUT)))          # (Hp, OUTp)
        b_lin = jnp.pad(params["b_lin"].astype(f32),
                        ((0, 0), (0, OUT_pad - OUT)))                  # (1, OUTp)
    else:
        w_lin = jnp.zeros((H_pad, OUT_pad), f32)                       # unused
        b_lin = jnp.zeros((1, OUT_pad), f32)

    kernel = functools.partial(_lstm_kernel, seq_len=T, b_pad=B_pad,
                               h_pad=H_pad, apply_linear=apply_linear)

    grid_spec = pltpu.PrefetchScalarGridSpec(
        num_scalar_prefetch=0,
        grid=(1,),                                         # single invocation
        in_specs=[
            pl.BlockSpec((T * B_pad, IN), lambda i: (0, 0)),      # x rows
            pl.BlockSpec((IN, 4 * H_pad), lambda i: (0, 0)),      # W_ih
            pl.BlockSpec((H_pad, 4 * H_pad), lambda i: (0, 0)),   # W_hh
            pl.BlockSpec((1, 4 * H_pad), lambda i: (0, 0)),       # bias
            pl.BlockSpec((H_pad, OUT_pad), lambda i: (0, 0)),     # W_lin
            pl.BlockSpec((1, OUT_pad), lambda i: (0, 0)),         # b_lin
        ],
        out_specs=pl.BlockSpec((B_pad, OUT_pad), lambda i: (0, 0)),
        scratch_shapes=[
            pltpu.VMEM((T * B_pad, 4 * H_pad), jnp.float32),      # hoisted gates_x
        ],
    )

    y_pad = pl.pallas_call(
        kernel,
        out_shape=jax.ShapeDtypeStruct((B_pad, OUT_pad), jnp.float32),
        grid_spec=grid_spec,
        compiler_params=pltpu.CompilerParams(
            dimension_semantics=("arbitrary",)),
    )(x_rows, w_ih, w_hh, bias, w_lin, b_lin)

    return y_pad[:B, :OUT]


def reference_forward(x_btf, params, hidden_size, out_size):
    """Pure-JAX reference (lax.scan LSTM) matching PyTorch semantics."""
    B, T, IN = x_btf.shape
    H = hidden_size
    w_ih, w_hh, bias = params["w_ih"], params["w_hh"], params["bias"]

    def step(carry, x_t):
        h, c = carry
        gates = x_t @ w_ih + h @ w_hh + bias[0]
        i = jax.nn.sigmoid(gates[:, 0 * H:1 * H])
        f = jax.nn.sigmoid(gates[:, 1 * H:2 * H])
        g = jnp.tanh(gates[:, 2 * H:3 * H])
        o = jax.nn.sigmoid(gates[:, 3 * H:4 * H])
        c = f * c + i * g
        h = o * jnp.tanh(c)
        return (h, c), None

    h0 = jnp.zeros((B, H), jnp.float32)
    c0 = jnp.zeros((B, H), jnp.float32)
    (h, _), _ = jax.lax.scan(step, (h0, c0), jnp.transpose(x_btf, (1, 0, 2)))
    if hidden_size == out_size:
        return h @ params["w_lin"] + params["b_lin"][0]
    return h


def make_params(key, in_size, hidden_size, out_size):
    H = hidden_size
    ks = jax.random.split(key, 6)
    scale = 0.1
    return {
        "w_ih": scale * jax.random.normal(ks[0], (in_size, 4 * H), jnp.float32),
        "w_hh": scale * jax.random.normal(ks[1], (H, 4 * H), jnp.float32),
        # combined b_ih + b_hh
        "bias": scale * jax.random.normal(ks[2], (1, 4 * H), jnp.float32),
        "w_lin": scale * jax.random.normal(ks[3], (H, out_size), jnp.float32),
        "b_lin": scale * jax.random.normal(ks[4], (1, out_size), jnp.float32),
    }


if __name__ == "__main__":
    B, T, IN = 2, 8, 32
    HIDDEN, OUT = 32, 32   # hidden == out -> linear_1 is applied (as in module)

    key = jax.random.PRNGKey(0)
    kx, kp = jax.random.split(key)
    x = jax.random.normal(kx, (B, T, IN), jnp.float32)
    params = make_params(kp, IN, HIDDEN, OUT)

    y = text_subnet_forward(x, params, HIDDEN, OUT)
    y = jax.block_until_ready(y)

    y_ref = reference_forward(x, params, HIDDEN, OUT)
    assert y.shape == (B, OUT), y.shape
    assert jnp.allclose(y, y_ref, atol=2e-5, rtol=2e-5), (
        "mismatch vs reference: max err = %e"
        % float(jnp.max(jnp.abs(y - y_ref))))

    print("KERNEL_OK")
</pallas_src>

<mosaic_0001>
module attributes {stable_mosaic.version = 11 : i64} {
  func.func @_lstm_kernel(%arg0: i32, %arg1: memref<64x32xf32, #tpu.memory_space<vmem>>, %arg2: memref<32x512xf32, #tpu.memory_space<vmem>>, %arg3: memref<128x512xf32, #tpu.memory_space<vmem>>, %arg4: memref<1x512xf32, #tpu.memory_space<vmem>>, %arg5: memref<128x128xf32, #tpu.memory_space<vmem>>, %arg6: memref<1x128xf32, #tpu.memory_space<vmem>>, %arg7: memref<8x128xf32, #tpu.memory_space<vmem>>, %arg8: memref<64x512xf32, #tpu.memory_space<vmem>>) attributes {dimension_semantics = [#tpu.dimension_semantics<arbitrary>], iteration_bounds = array<i64: 1>, scalar_prefetch = 0 : i64, scratch_operands = 1 : i64, tpu.core_type = #tpu.core_type<tc>, window_params = [{pipeline_mode = #tpu.pipeline_mode<synchronous>, transform_indices = @transform_0, window_bounds = array<i64: 64, 32>}, {pipeline_mode = #tpu.pipeline_mode<synchronous>, transform_indices = @transform_1, window_bounds = array<i64: 32, 512>}, {pipeline_mode = #tpu.pipeline_mode<synchronous>, transform_indices = @transform_2, window_bounds = array<i64: 128, 512>}, {pipeline_mode = #tpu.pipeline_mode<synchronous>, transform_indices = @transform_3, window_bounds = array<i64: 1, 512>}, {pipeline_mode = #tpu.pipeline_mode<synchronous>, transform_indices = @transform_4, window_bounds = array<i64: 128, 128>}, {pipeline_mode = #tpu.pipeline_mode<synchronous>, transform_indices = @transform_5, window_bounds = array<i64: 1, 128>}, {pipeline_mode = #tpu.pipeline_mode<synchronous>, transform_indices = @transform_6, window_bounds = array<i64: 8, 128>}]} {
    %c0 = arith.constant 0 : index
    %c0_0 = arith.constant 0 : index
    %0 = vector.load %arg1[%c0, %c0_0] : memref<64x32xf32, #tpu.memory_space<vmem>>, vector<64x32xf32>
    %c0_1 = arith.constant 0 : index
    %c0_2 = arith.constant 0 : index
    %1 = vector.load %arg2[%c0_1, %c0_2] : memref<32x512xf32, #tpu.memory_space<vmem>>, vector<32x512xf32>
    %cst = arith.constant dense<0.000000e+00> : vector<64x512xf32>
    %2 = tpu.matmul %0, %1, %cst {dimension_numbers = #tpu.dot_dimension_numbers<[1], [0], [0], [1], [0, 0, 1, 1], [], []>} : vector<64x32xf32>, vector<32x512xf32>, vector<64x512xf32> -> vector<64x512xf32>
    %c0_3 = arith.constant 0 : index
    %c0_4 = arith.constant 0 : index
    %3 = vector.load %arg4[%c0_3, %c0_4] : memref<1x512xf32, #tpu.memory_space<vmem>>, vector<1x512xf32>
    %4 = vector.broadcast %3 : vector<1x512xf32> to vector<64x512xf32>
    %5 = arith.addf %2, %4 : vector<64x512xf32>
    %c0_5 = arith.constant 0 : index
    %c0_6 = arith.constant 0 : index
    %6 = vector.load %arg8[%c0_5, %c0_6] : memref<64x512xf32, #tpu.memory_space<vmem>>, vector<64x512xf32>
    tpu.vector_store %arg8[%c0_5, %c0_6], %5 {strides = array<i32>} : memref<64x512xf32, #tpu.memory_space<vmem>>, vector<64x512xf32>,
    %c0_7 = arith.constant 0 : index
    %c0_8 = arith.constant 0 : index
    %7 = vector.load %arg3[%c0_7, %c0_8] : memref<128x512xf32, #tpu.memory_space<vmem>>, vector<128x512xf32>
    %cst_9 = arith.constant 0.000000e+00 : f32
    %8 = vector.broadcast %cst_9 : f32 to vector<8x128xf32>
    %cst_10 = arith.constant 0.000000e+00 : f32
    %9 = vector.broadcast %cst_10 : f32 to vector<8x128xf32>
    %c0_i32 = arith.constant 0 : i32
    %c8_i32 = arith.constant 8 : i32
    %10 = arith.muli %c0_i32, %c8_i32 : i32
    %11 = tpu.assume_multiple %10, 8 : i32
    %12 = arith.index_cast %11 : i32 to index
    %c0_11 = arith.constant 0 : index
    %13 = vector.load %arg8[%12, %c0_11] : memref<64x512xf32, #tpu.memory_space<vmem>>, vector<8x512xf32>
    %cst_12 = arith.constant dense<0.000000e+00> : vector<8x512xf32>
    %14 = tpu.matmul %8, %7, %cst_12 {dimension_numbers = #tpu.dot_dimension_numbers<[1], [0], [0], [1], [0, 0, 1, 1], [], []>} : vector<8x128xf32>, vector<128x512xf32>, vector<8x512xf32> -> vector<8x512xf32>
    %15 = arith.addf %13, %14 : vector<8x512xf32>
    %16 = vector.extract_strided_slice %15 {offsets = [0, 0], sizes = [8, 128], strides = [1, 1]} : vector<8x512xf32> to vector<8x128xf32>
    %17 = arith.negf %16 : vector<8x128xf32>
    %18 = math.exp %17 : vector<8x128xf32>
    %cst_13 = arith.constant 1.000000e+00 : f32
    %19 = vector.broadcast %cst_13 : f32 to vector<8x128xf32>
    %20 = arith.addf %19, %18 : vector<8x128xf32>
    %21 = arith.divf %19, %20 : vector<8x128xf32>
    %22 = vector.extract_strided_slice %15 {offsets = [0, 128], sizes = [8, 128], strides = [1, 1]} : vector<8x512xf32> to vector<8x128xf32>
    %23 = arith.negf %22 : vector<8x128xf32>
    %24 = math.exp %23 : vector<8x128xf32>
    %cst_14 = arith.constant 1.000000e+00 : f32
    %25 = vector.broadcast %cst_14 : f32 to vector<8x128xf32>
    %26 = arith.addf %25, %24 : vector<8x128xf32>
    %27 = arith.divf %25, %26 : vector<8x128xf32>
    %28 = vector.extract_strided_slice %15 {offsets = [0, 256], sizes = [8, 128], strides = [1, 1]} : vector<8x512xf32> to vector<8x128xf32>
    %29 = math.tanh %28 : vector<8x128xf32>
    %30 = vector.extract_strided_slice %15 {offsets = [0, 384], sizes = [8, 128], strides = [1, 1]} : vector<8x512xf32> to vector<8x128xf32>
    %31 = arith.negf %30 : vector<8x128xf32>
    %32 = math.exp %31 : vector<8x128xf32>
    %cst_15 = arith.constant 1.000000e+00 : f32
    %33 = vector.broadcast %cst_15 : f32 to vector<8x128xf32>
    %34 = arith.addf %33, %32 : vector<8x128xf32>
    %35 = arith.divf %33, %34 : vector<8x128xf32>
    %36 = arith.mulf %27, %9 : vector<8x128xf32>
    %37 = arith.mulf %21, %29 : vector<8x128xf32>
    %38 = arith.addf %36, %37 : vector<8x128xf32>
    %39 = math.tanh %38 : vector<8x128xf32>
    %40 = arith.mulf %35, %39 : vector<8x128xf32>
    %c1_i32 = arith.constant 1 : i32
    %c8_i32_16 = arith.constant 8 : i32
    %41 = arith.muli %c1_i32, %c8_i32_16 : i32
    %42 = tpu.assume_multiple %41, 8 : i32
    %43 = arith.index_cast %42 : i32 to index
    %c0_17 = arith.constant 0 : index
    %44 = vector.load %arg8[%43, %c0_17] : memref<64x512xf32, #tpu.memory_space<vmem>>, vector<8x512xf32>
    %cst_18 = arith.constant dense<0.000000e+00> : vector<8x512xf32>
    %45 = tpu.matmul %40, %7, %cst_18 {dimension_numbers = #tpu.dot_dimension_numbers<[1], [0], [0], [1], [0, 0, 1, 1], [], []>} : vector<8x128xf32>, vector<128x512xf32>, vector<8x512xf32> -> vector<8x512xf32>
    %46 = arith.addf %44, %45 : vector<8x512xf32>
    %47 = vector.extract_strided_slice %46 {offsets = [0, 0], sizes = [8, 128], strides = [1, 1]} : vector<8x512xf32> to vector<8x128xf32>
    %48 = arith.negf %47 : vector<8x128xf32>
    %49 = math.exp %48 : vector<8x128xf32>
    %cst_19 = arith.constant 1.000000e+00 : f32
    %50 = vector.broadcast %cst_19 : f32 to vector<8x128xf32>
    %51 = arith.addf %50, %49 : vector<8x128xf32>
    %52 = arith.divf %50, %51 : vector<8x128xf32>
    %53 = vector.extract_strided_slice %46 {offsets = [0, 128], sizes = [8, 128], strides = [1, 1]} : vector<8x512xf32> to vector<8x128xf32>
    %54 = arith.negf %53 : vector<8x128xf32>
    %55 = math.exp %54 : vector<8x128xf32>
    %cst_20 = arith.constant 1.000000e+00 : f32
    %56 = vector.broadcast %cst_20 : f32 to vector<8x128xf32>
    %57 = arith.addf %56, %55 : vector<8x128xf32>
    %58 = arith.divf %56, %57 : vector<8x128xf32>
    %59 = vector.extract_strided_slice %46 {offsets = [0, 256], sizes = [8, 128], strides = [1, 1]} : vector<8x512xf32> to vector<8x128xf32>
    %60 = math.tanh %59 : vector<8x128xf32>
    %61 = vector.extract_strided_slice %46 {offsets = [0, 384], sizes = [8, 128], strides = [1, 1]} : vector<8x512xf32> to vector<8x128xf32>
    %62 = arith.negf %61 : vector<8x128xf32>
    %63 = math.exp %62 : vector<8x128xf32>
    %cst_21 = arith.constant 1.000000e+00 : f32
    %64 = vector.broadcast %cst_21 : f32 to vector<8x128xf32>
    %65 = arith.addf %64, %63 : vector<8x128xf32>
    %66 = arith.divf %64, %65 : vector<8x128xf32>
    %67 = arith.mulf %58, %38 : vector<8x128xf32>
    %68 = arith.mulf %52, %60 : vector<8x128xf32>
    %69 = arith.addf %67, %68 : vector<8x128xf32>
    %70 = math.tanh %69 : vector<8x128xf32>
    %71 = arith.mulf %66, %70 : vector<8x128xf32>
    %c2_i32 = arith.constant 2 : i32
    %c8_i32_22 = arith.constant 8 : i32
    %72 = arith.muli %c2_i32, %c8_i32_22 : i32
    %73 = tpu.assume_multiple %72, 8 : i32
    %74 = arith.index_cast %73 : i32 to index
    %c0_23 = arith.constant 0 : index
    %75 = vector.load %arg8[%74, %c0_23] : memref<64x512xf32, #tpu.memory_space<vmem>>, vector<8x512xf32>
    %cst_24 = arith.constant dense<0.000000e+00> : vector<8x512xf32>
    %76 = tpu.matmul %71, %7, %cst_24 {dimension_numbers = #tpu.dot_dimension_numbers<[1], [0], [0], [1], [0, 0, 1, 1], [], []>} : vector<8x128xf32>, vector<128x512xf32>, vector<8x512xf32> -> vector<8x512xf32>
    %77 = arith.addf %75, %76 : vector<8x512xf32>
    %78 = vector.extract_strided_slice %77 {offsets = [0, 0], sizes = [8, 128], strides = [1, 1]} : vector<8x512xf32> to vector<8x128xf32>
    %79 = arith.negf %78 : vector<8x128xf32>
    %80 = math.exp %79 : vector<8x128xf32>
    %cst_25 = arith.constant 1.000000e+00 : f32
    %81 = vector.broadcast %cst_25 : f32 to vector<8x128xf32>
    %82 = arith.addf %81, %80 : vector<8x128xf32>
    %83 = arith.divf %81, %82 : vector<8x128xf32>
    %84 = vector.extract_strided_slice %77 {offsets = [0, 128], sizes = [8, 128], strides = [1, 1]} : vector<8x512xf32> to vector<8x128xf32>
    %85 = arith.negf %84 : vector<8x128xf32>
    %86 = math.exp %85 : vector<8x128xf32>
    %cst_26 = arith.constant 1.000000e+00 : f32
    %87 = vector.broadcast %cst_26 : f32 to vector<8x128xf32>
    %88 = arith.addf %87, %86 : vector<8x128xf32>
    %89 = arith.divf %87, %88 : vector<8x128xf32>
    %90 = vector.extract_strided_slice %77 {offsets = [0, 256], sizes = [8, 128], strides = [1, 1]} : vector<8x512xf32> to vector<8x128xf32>
    %91 = math.tanh %90 : vector<8x128xf32>
    %92 = vector.extract_strided_slice %77 {offsets = [0, 384], sizes = [8, 128], strides = [1, 1]} : vector<8x512xf32> to vector<8x128xf32>
    %93 = arith.negf %92 : vector<8x128xf32>
    %94 = math.exp %93 : vector<8x128xf32>
    %cst_27 = arith.constant 1.000000e+00 : f32
    %95 = vector.broadcast %cst_27 : f32 to vector<8x128xf32>
    %96 = arith.addf %95, %94 : vector<8x128xf32>
    %97 = arith.divf %95, %96 : vector<8x128xf32>
    %98 = arith.mulf %89, %69 : vector<8x128xf32>
    %99 = arith.mulf %83, %91 : vector<8x128xf32>
    %100 = arith.addf %98, %99 : vector<8x128xf32>
    %101 = math.tanh %100 : vector<8x128xf32>
    %102 = arith.mulf %97, %101 : vector<8x128xf32>
    %c3_i32 = arith.constant 3 : i32
    %c8_i32_28 = arith.constant 8 : i32
    %103 = arith.muli %c3_i32, %c8_i32_28 : i32
    %104 = tpu.assume_multiple %103, 8 : i32
    %105 = arith.index_cast %104 : i32 to index
    %c0_29 = arith.constant 0 : index
    %106 = vector.load %arg8[%105, %c0_29] : memref<64x512xf32, #tpu.memory_space<vmem>>, vector<8x512xf32>
    %cst_30 = arith.constant dense<0.000000e+00> : vector<8x512xf32>
    %107 = tpu.matmul %102, %7, %cst_30 {dimension_numbers = #tpu.dot_dimension_numbers<[1], [0], [0], [1], [0, 0, 1, 1], [], []>} : vector<8x128xf32>, vector<128x512xf32>, vector<8x512xf32> -> vector<8x512xf32>
    %108 = arith.addf %106, %107 : vector<8x512xf32>
    %109 = vector.extract_strided_slice %108 {offsets = [0, 0], sizes = [8, 128], strides = [1, 1]} : vector<8x512xf32> to vector<8x128xf32>
    %110 = arith.negf %109 : vector<8x128xf32>
    %111 = math.exp %110 : vector<8x128xf32>
    %cst_31 = arith.constant 1.000000e+00 : f32
    %112 = vector.broadcast %cst_31 : f32 to vector<8x128xf32>
    %113 = arith.addf %112, %111 : vector<8x128xf32>
    %114 = arith.divf %112, %113 : vector<8x128xf32>
    %115 = vector.extract_strided_slice %108 {offsets = [0, 128], sizes = [8, 128], strides = [1, 1]} : vector<8x512xf32> to vector<8x128xf32>
    %116 = arith.negf %115 : vector<8x128xf32>
    %117 = math.exp %116 : vector<8x128xf32>
    %cst_32 = arith.constant 1.000000e+00 : f32
    %118 = vector.broadcast %cst_32 : f32 to vector<8x128xf32>
    %119 = arith.addf %118, %117 : vector<8x128xf32>
    %120 = arith.divf %118, %119 : vector<8x128xf32>
    %121 = vector.extract_strided_slice %108 {offsets = [0, 256], sizes = [8, 128], strides = [1, 1]} : vector<8x512xf32> to vector<8x128xf32>
    %122 = math.tanh %121 : vector<8x128xf32>
    %123 = vector.extract_strided_slice %108 {offsets = [0, 384], sizes = [8, 128], strides = [1, 1]} : vector<8x512xf32> to vector<8x128xf32>
    %124 = arith.negf %123 : vector<8x128xf32>
    %125 = math.exp %124 : vector<8x128xf32>
    %cst_33 = arith.constant 1.000000e+00 : f32
    %126 = vector.broadcast %cst_33 : f32 to vector<8x128xf32>
    %127 = arith.addf %126, %125 : vector<8x128xf32>
    %128 = arith.divf %126, %127 : vector<8x128xf32>
    %129 = arith.mulf %120, %100 : vector<8x128xf32>
    %130 = arith.mulf %114, %122 : vector<8x128xf32>
    %131 = arith.addf %129, %130 : vector<8x128xf32>
    %132 = math.tanh %131 : vector<8x128xf32>
    %133 = arith.mulf %128, %132 : vector<8x128xf32>
    %c4_i32 = arith.constant 4 : i32
    %c8_i32_34 = arith.constant 8 : i32
    %134 = arith.muli %c4_i32, %c8_i32_34 : i32
    %135 = tpu.assume_multiple %134, 8 : i32
    %136 = arith.index_cast %135 : i32 to index
    %c0_35 = arith.constant 0 : index
    %137 = vector.load %arg8[%136, %c0_35] : memref<64x512xf32, #tpu.memory_space<vmem>>, vector<8x512xf32>
    %cst_36 = arith.constant dense<0.000000e+00> : vector<8x512xf32>
    %138 = tpu.matmul %133, %7, %cst_36 {dimension_numbers = #tpu.dot_dimension_numbers<[1], [0], [0], [1], [0, 0, 1, 1], [], []>} : vector<8x128xf32>, vector<128x512xf32>, vector<8x512xf32> -> vector<8x512xf32>
    %139 = arith.addf %137, %138 : vector<8x512xf32>
    %140 = vector.extract_strided_slice %139 {offsets = [0, 0], sizes = [8, 128], strides = [1, 1]} : vector<8x512xf32> to vector<8x128xf32>
    %141 = arith.negf %140 : vector<8x128xf32>
    %142 = math.exp %141 : vector<8x128xf32>
    %cst_37 = arith.constant 1.000000e+00 : f32
    %143 = vector.broadcast %cst_37 : f32 to vector<8x128xf32>
    %144 = arith.addf %143, %142 : vector<8x128xf32>
    %145 = arith.divf %143, %144 : vector<8x128xf32>
    %146 = vector.extract_strided_slice %139 {offsets = [0, 128], sizes = [8, 128], strides = [1, 1]} : vector<8x512xf32> to vector<8x128xf32>
    %147 = arith.negf %146 : vector<8x128xf32>
    %148 = math.exp %147 : vector<8x128xf32>
    %cst_38 = arith.constant 1.000000e+00 : f32
    %149 = vector.broadcast %cst_38 : f32 to vector<8x128xf32>
    %150 = arith.addf %149, %148 : vector<8x128xf32>
    %151 = arith.divf %149, %150 : vector<8x128xf32>
    %152 = vector.extract_strided_slice %139 {offsets = [0, 256], sizes = [8, 128], strides = [1, 1]} : vector<8x512xf32> to vector<8x128xf32>
    %153 = math.tanh %152 : vector<8x128xf32>
    %154 = vector.extract_strided_slice %139 {offsets = [0, 384], sizes = [8, 128], strides = [1, 1]} : vector<8x512xf32> to vector<8x128xf32>
    %155 = arith.negf %154 : vector<8x128xf32>
    %156 = math.exp %155 : vector<8x128xf32>
    %cst_39 = arith.constant 1.000000e+00 : f32
    %157 = vector.broadcast %cst_39 : f32 to vector<8x128xf32>
    %158 = arith.addf %157, %156 : vector<8x128xf32>
    %159 = arith.divf %157, %158 : vector<8x128xf32>
    %160 = arith.mulf %151, %131 : vector<8x128xf32>
    %161 = arith.mulf %145, %153 : vector<8x128xf32>
    %162 = arith.addf %160, %161 : vector<8x128xf32>
    %163 = math.tanh %162 : vector<8x128xf32>
    %164 = arith.mulf %159, %163 : vector<8x128xf32>
    %c5_i32 = arith.constant 5 : i32
    %c8_i32_40 = arith.constant 8 : i32
    %165 = arith.muli %c5_i32, %c8_i32_40 : i32
    %166 = tpu.assume_multiple %165, 8 : i32
    %167 = arith.index_cast %166 : i32 to index
    %c0_41 = arith.constant 0 : index
    %168 = vector.load %arg8[%167, %c0_41] : memref<64x512xf32, #tpu.memory_space<vmem>>, vector<8x512xf32>
    %cst_42 = arith.constant dense<0.000000e+00> : vector<8x512xf32>
    %169 = tpu.matmul %164, %7, %cst_42 {dimension_numbers = #tpu.dot_dimension_numbers<[1], [0], [0], [1], [0, 0, 1, 1], [], []>} : vector<8x128xf32>, vector<128x512xf32>, vector<8x512xf32> -> vector<8x512xf32>
    %170 = arith.addf %168, %169 : vector<8x512xf32>
    %171 = vector.extract_strided_slice %170 {offsets = [0, 0], sizes = [8, 128], strides = [1, 1]} : vector<8x512xf32> to vector<8x128xf32>
    %172 = arith.negf %171 : vector<8x128xf32>
    %173 = math.exp %172 : vector<8x128xf32>
    %cst_43 = arith.constant 1.000000e+00 : f32
    %174 = vector.broadcast %cst_43 : f32 to vector<8x128xf32>
    %175 = arith.addf %174, %173 : vector<8x128xf32>
    %176 = arith.divf %174, %175 : vector<8x128xf32>
    %177 = vector.extract_strided_slice %170 {offsets = [0, 128], sizes = [8, 128], strides = [1, 1]} : vector<8x512xf32> to vector<8x128xf32>
    %178 = arith.negf %177 : vector<8x128xf32>
    %179 = math.exp %178 : vector<8x128xf32>
    %cst_44 = arith.constant 1.000000e+00 : f32
    %180 = vector.broadcast %cst_44 : f32 to vector<8x128xf32>
    %181 = arith.addf %180, %179 : vector<8x128xf32>
    %182 = arith.divf %180, %181 : vector<8x128xf32>
    %183 = vector.extract_strided_slice %170 {offsets = [0, 256], sizes = [8, 128], strides = [1, 1]} : vector<8x512xf32> to vector<8x128xf32>
    %184 = math.tanh %183 : vector<8x128xf32>
    %185 = vector.extract_strided_slice %170 {offsets = [0, 384], sizes = [8, 128], strides = [1, 1]} : vector<8x512xf32> to vector<8x128xf32>
    %186 = arith.negf %185 : vector<8x128xf32>
    %187 = math.exp %186 : vector<8x128xf32>
    %cst_45 = arith.constant 1.000000e+00 : f32
    %188 = vector.broadcast %cst_45 : f32 to vector<8x128xf32>
    %189 = arith.addf %188, %187 : vector<8x128xf32>
    %190 = arith.divf %188, %189 : vector<8x128xf32>
    %191 = arith.mulf %182, %162 : vector<8x128xf32>
    %192 = arith.mulf %176, %184 : vector<8x128xf32>
    %193 = arith.addf %191, %192 : vector<8x128xf32>
    %194 = math.tanh %193 : vector<8x128xf32>
    %195 = arith.mulf %190, %194 : vector<8x128xf32>
    %c6_i32 = arith.constant 6 : i32
    %c8_i32_46 = arith.constant 8 : i32
    %196 = arith.muli %c6_i32, %c8_i32_46 : i32
    %197 = tpu.assume_multiple %196, 8 : i32
    %198 = arith.index_cast %197 : i32 to index
    %c0_47 = arith.constant 0 : index
    %199 = vector.load %arg8[%198, %c0_47] : memref<64x512xf32, #tpu.memory_space<vmem>>, vector<8x512xf32>
    %cst_48 = arith.constant dense<0.000000e+00> : vector<8x512xf32>
    %200 = tpu.matmul %195, %7, %cst_48 {dimension_numbers = #tpu.dot_dimension_numbers<[1], [0], [0], [1], [0, 0, 1, 1], [], []>} : vector<8x128xf32>, vector<128x512xf32>, vector<8x512xf32> -> vector<8x512xf32>
    %201 = arith.addf %199, %200 : vector<8x512xf32>
    %202 = vector.extract_strided_slice %201 {offsets = [0, 0], sizes = [8, 128], strides = [1, 1]} : vector<8x512xf32> to vector<8x128xf32>
    %203 = arith.negf %202 : vector<8x128xf32>
    %204 = math.exp %203 : vector<8x128xf32>
    %cst_49 = arith.constant 1.000000e+00 : f32
    %205 = vector.broadcast %cst_49 : f32 to vector<8x128xf32>
    %206 = arith.addf %205, %204 : vector<8x128xf32>
    %207 = arith.divf %205, %206 : vector<8x128xf32>
    %208 = vector.extract_strided_slice %201 {offsets = [0, 128], sizes = [8, 128], strides = [1, 1]} : vector<8x512xf32> to vector<8x128xf32>
    %209 = arith.negf %208 : vector<8x128xf32>
    %210 = math.exp %209 : vector<8x128xf32>
    %cst_50 = arith.constant 1.000000e+00 : f32
    %211 = vector.broadcast %cst_50 : f32 to vector<8x128xf32>
    %212 = arith.addf %211, %210 : vector<8x128xf32>
    %213 = arith.divf %211, %212 : vector<8x128xf32>
    %214 = vector.extract_strided_slice %201 {offsets = [0, 256], sizes = [8, 128], strides = [1, 1]} : vector<8x512xf32> to vector<8x128xf32>
    %215 = math.tanh %214 : vector<8x128xf32>
    %216 = vector.extract_strided_slice %201 {offsets = [0, 384], sizes = [8, 128], strides = [1, 1]} : vector<8x512xf32> to vector<8x128xf32>
    %217 = arith.negf %216 : vector<8x128xf32>
    %218 = math.exp %217 : vector<8x128xf32>
    %cst_51 = arith.constant 1.000000e+00 : f32
    %219 = vector.broadcast %cst_51 : f32 to vector<8x128xf32>
    %220 = arith.addf %219, %218 : vector<8x128xf32>
    %221 = arith.divf %219, %220 : vector<8x128xf32>
    %222 = arith.mulf %213, %193 : vector<8x128xf32>
    %223 = arith.mulf %207, %215 : vector<8x128xf32>
    %224 = arith.addf %222, %223 : vector<8x128xf32>
    %225 = math.tanh %224 : vector<8x128xf32>
    %226 = arith.mulf %221, %225 : vector<8x128xf32>
    %c7_i32 = arith.constant 7 : i32
    %c8_i32_52 = arith.constant 8 : i32
    %227 = arith.muli %c7_i32, %c8_i32_52 : i32
    %228 = tpu.assume_multiple %227, 8 : i32
    %229 = arith.index_cast %228 : i32 to index
    %c0_53 = arith.constant 0 : index
    %230 = vector.load %arg8[%229, %c0_53] : memref<64x512xf32, #tpu.memory_space<vmem>>, vector<8x512xf32>
    %cst_54 = arith.constant dense<0.000000e+00> : vector<8x512xf32>
    %231 = tpu.matmul %226, %7, %cst_54 {dimension_numbers = #tpu.dot_dimension_numbers<[1], [0], [0], [1], [0, 0, 1, 1], [], []>} : vector<8x128xf32>, vector<128x512xf32>, vector<8x512xf32> -> vector<8x512xf32>
    %232 = arith.addf %230, %231 : vector<8x512xf32>
    %233 = vector.extract_strided_slice %232 {offsets = [0, 0], sizes = [8, 128], strides = [1, 1]} : vector<8x512xf32> to vector<8x128xf32>
    %234 = arith.negf %233 : vector<8x128xf32>
    %235 = math.exp %234 : vector<8x128xf32>
    %cst_55 = arith.constant 1.000000e+00 : f32
    %236 = vector.broadcast %cst_55 : f32 to vector<8x128xf32>
    %237 = arith.addf %236, %235 : vector<8x128xf32>
    %238 = arith.divf %236, %237 : vector<8x128xf32>
    %239 = vector.extract_strided_slice %232 {offsets = [0, 128], sizes = [8, 128], strides = [1, 1]} : vector<8x512xf32> to vector<8x128xf32>
    %240 = arith.negf %239 : vector<8x128xf32>
    %241 = math.exp %240 : vector<8x128xf32>
    %cst_56 = arith.constant 1.000000e+00 : f32
    %242 = vector.broadcast %cst_56 : f32 to vector<8x128xf32>
    %243 = arith.addf %242, %241 : vector<8x128xf32>
    %244 = arith.divf %242, %243 : vector<8x128xf32>
    %245 = vector.extract_strided_slice %232 {offsets = [0, 256], sizes = [8, 128], strides = [1, 1]} : vector<8x512xf32> to vector<8x128xf32>
    %246 = math.tanh %245 : vector<8x128xf32>
    %247 = vector.extract_strided_slice %232 {offsets = [0, 384], sizes = [8, 128], strides = [1, 1]} : vector<8x512xf32> to vector<8x128xf32>
    %248 = arith.negf %247 : vector<8x128xf32>
    %249 = math.exp %248 : vector<8x128xf32>
    %cst_57 = arith.constant 1.000000e+00 : f32
    %250 = vector.broadcast %cst_57 : f32 to vector<8x128xf32>
    %251 = arith.addf %250, %249 : vector<8x128xf32>
    %252 = arith.divf %250, %251 : vector<8x128xf32>
    %253 = arith.mulf %244, %224 : vector<8x128xf32>
    %254 = arith.mulf %238, %246 : vector<8x128xf32>
    %255 = arith.addf %253, %254 : vector<8x128xf32>
    %256 = math.tanh %255 : vector<8x128xf32>
    %257 = arith.mulf %252, %256 : vector<8x128xf32>
    %c8_i32_58 = arith.constant 8 : i32
    %c0_59 = arith.constant 0 : index
    %c0_60 = arith.constant 0 : index
    %258 = vector.load %arg5[%c0_59, %c0_60] : memref<128x128xf32, #tpu.memory_space<vmem>>, vector<128x128xf32>
    %cst_61 = arith.constant dense<0.000000e+00> : vector<8x128xf32>
    %259 = tpu.matmul %257, %258, %cst_61 {dimension_numbers = #tpu.dot_dimension_numbers<[1], [0], [0], [1], [0, 0, 1, 1], [], []>} : vector<8x128xf32>, vector<128x128xf32>, vector<8x128xf32> -> vector<8x128xf32>
    %c0_62 = arith.constant 0 : index
    %c0_63 = arith.constant 0 : index
    %260 = vector.load %arg6[%c0_62, %c0_63] : memref<1x128xf32, #tpu.memory_space<vmem>>, vector<1x128xf32>
    %261 = vector.broadcast %260 : vector<1x128xf32> to vector<8x128xf32>
    %262 = arith.addf %259, %261 : vector<8x128xf32>
    %c0_64 = arith.constant 0 : index
    %c0_65 = arith.constant 0 : index
    %263 = vector.load %arg7[%c0_64, %c0_65] : memref<8x128xf32, #tpu.memory_space<vmem>>, vector<8x128xf32>
    tpu.vector_store %arg7[%c0_64, %c0_65], %262 {strides = array<i32>} : memref<8x128xf32, #tpu.memory_space<vmem>>, vector<8x128xf32>,
    return
  }
  func.func @transform_0(%arg0: i32) -> (i32, i32) {
    %c0_i32 = arith.constant 0 : i32
    %c0_i32_0 = arith.constant 0 : i32
    %c0_i32_1 = arith.constant 0 : i32
    return %c0_i32, %c0_i32_0 : i32, i32
  }
  func.func @transform_1(%arg0: i32) -> (i32, i32) {
    %c0_i32 = arith.constant 0 : i32
    %c0_i32_0 = arith.constant 0 : i32
    %c0_i32_1 = arith.constant 0 : i32
    return %c0_i32, %c0_i32_0 : i32, i32
  }
  func.func @transform_2(%arg0: i32) -> (i32, i32) {
    %c0_i32 = arith.constant 0 : i32
    %c0_i32_0 = arith.constant 0 : i32
    %c0_i32_1 = arith.constant 0 : i32
    return %c0_i32, %c0_i32_0 : i32, i32
  }
  func.func @transform_3(%arg0: i32) -> (i32, i32) {
    %c0_i32 = arith.constant 0 : i32
    %c0_i32_0 = arith.constant 0 : i32
    %c0_i32_1 = arith.constant 0 : i32
    return %c0_i32, %c0_i32_0 : i32, i32
  }
  func.func @transform_4(%arg0: i32) -> (i32, i32) {
    %c0_i32 = arith.constant 0 : i32
    %c0_i32_0 = arith.constant 0 : i32
    %c0_i32_1 = arith.constant 0 : i32
    return %c0_i32, %c0_i32_0 : i32, i32
  }
  func.func @transform_5(%arg0: i32) -> (i32, i32) {
    %c0_i32 = arith.constant 0 : i32
    %c0_i32_0 = arith.constant 0 : i32
    %c0_i32_1 = arith.constant 0 : i32
    return %c0_i32, %c0_i32_0 : i32, i32
  }
  func.func @transform_6(%arg0: i32) -> (i32, i32) {
    %c0_i32 = arith.constant 0 : i32
    %c0_i32_0 = arith.constant 0 : i32
    %c0_i32_1 = arith.constant 0 : i32
    return %c0_i32, %c0_i32_0 : i32, i32
  }
}

</mosaic_0001>

<bundles_post_ra>
// kernel: tpu_custom_call.1
= control target key start
LH: loop header
LB: loop body
LE: loop exit
PB: predicated region body
PF: predicated region fallthrough
CT: control target
= control target key end

     0   :  { %11 = vsyncpa [#allocation4], 0  ;;  %s3438_s0 = inlined_call_operand.vmem [shape: f32[64,32], index: 0, kind: input, shape index: {}]   ;;  %s3439_s1 = inlined_call_operand.hbm [shape: f32[32,512], index: 1, kind: input, shape index: {}]   ;;  %s3440_s2 = inlined_call_operand.hbm [shape: f32[128,512], index: 2, kind: input, shape index: {}]   ;;  %s3441_s3 = inlined_call_operand.vmem [shape: f32[1,512], index: 3, kind: input, shape index: {}]   ;;  %s3442_s4 = inlined_call_operand.hbm [shape: f32[128,128], index: 4, kind: input, shape index: {}]   ;;  %s3443_s5 = inlined_call_operand.vmem [shape: f32[1,128], index: 5, kind: input, shape index: {}]   ;;  %s3444_s6 = inlined_call_operand.hbm [shape: f32[8,128], index: 6, kind: output, shape index: {}]  }
   0x1   :  { %12 = vsyncpa [#allocation7], 0 }
   0x2   :  { %13 = vsyncpa [#allocation5], 0  ;;  %s2372_s21 = smov [#allocation6]   ;;  %s2373_s23 = smov [#allocation3]  }
   0x3   :  { %s33_s22 = sshll.u32 %s2372_s21, 4  ;;  %s21_s24 = sshll.u32 %s2373_s23, 4  ;;  %s34_s22 = int_to_ptr.vmem [resolvable:$true] %s33_s22  ;;  %s22_s24 = int_to_ptr.vmem [resolvable:$true] %s21_s24 }
   0x4   :  { %s2294_s25 = scalar_lea.vmem %s34_s22, 8192  ;;  %p2299_p1 = scmp.lt.s32.totalorder %s34_s22, %s34_s22 }
   0x5   :  { %p2295_p0 = scmp.ne.s32.totalorder %s34_s22, %s2294_s25  ;;  %p2300_p2 = scmp.lt.s32.totalorder %s2294_s25, %s2294_s25 }
   0x7   :  { %p2301_p3 = por %p2300_p2, %p2299_p1 }
   0x9   :  { %p2302_p4 = pnand %p2301_p3, %p2295_p0 }
   0xb   :  { %2305 = shalt.err (!%p2302_p4)
}
   0xc   :  { %s2374_s26 = smov 512   ;;  %s2375_s27 = smov 32  }
   0xd   :  { %39 = dma.hbm_to_vmem [thread:$0]  %s3440_s2, 8192, %s34_s22, [#allocation7], %s2374_s26, %s2374_s26, %s2375_s27  }
   0xe   :  { %s2314_s30 = scalar_lea.vmem %s22_s24, 2048  ;;  %p2319_p6 = scmp.lt.s32.totalorder %s22_s24, %s22_s24 }
   0xf   :  { %p2315_p5 = scmp.ne.s32.totalorder %s22_s24, %s2314_s30  ;;  %p2320_p7 = scmp.lt.s32.totalorder %s2314_s30, %s2314_s30 }
  0x11   :  { %p2321_p8 = por %p2320_p7, %p2319_p6 }
  0x13   :  { %p2322_p9 = pnand %p2321_p8, %p2315_p5 }
  0x15   :  { %2325 = shalt.err (!%p2322_p9)
}
  0x16   :  { %27 = dma.hbm_to_vmem [thread:$0]  %s3439_s1, 2048, %s22_s24, [#allocation4], %s2374_s26, %s2374_s26, %s2375_s27  }
  0x17   :  { %s2376_s9 = smov [#allocation8]  }
  0x18   :  { %s47_s10 = sshll.u32 %s2376_s9, 4  ;;  %s48_s10 = int_to_ptr.vmem [resolvable:$true] %s47_s10 }
  0x19   :  { %s2334_s11 = scalar_lea.vmem %s48_s10, 2048  ;;  %p2339_p11 = scmp.lt.s32.totalorder %s48_s10, %s48_s10 }
  0x1a   :  { %p2335_p10 = scmp.ne.s32.totalorder %s48_s10, %s2334_s11  ;;  %p2340_p12 = scmp.lt.s32.totalorder %s2334_s11, %s2334_s11 }
  0x1c   :  { %p2341_p13 = por %p2340_p12, %p2339_p11 }
  0x1e   :  { %p2342_p0 = pnand %p2341_p13, %p2335_p10 }
  0x20   :  { %2345 = shalt.err (!%p2342_p0)
}
  0x21   :  { %s2377_s2 = smov 128   ;;  %s2378_s12 = smov 8  }
  0x22   :  { %53 = dma.hbm_to_vmem [thread:$0]  %s3442_s4, 2048, %s48_s10, [#allocation7], %s2377_s2, %s2377_s2, %s2378_s12  }
  0x23   :  { %2366 = dma.done.wait [#allocation4], 2048  }
  0x24   :  { %2367 = vsyncadd [#allocation4], 4294965248 }
  0x25   :  { %2368 = dma.done.wait [#allocation7], 10240  }
  0x26   :  { %2369 = vsyncadd [#allocation7], 4294957056  ;;  %v3445_v0 = vmov 0.0   ;;  %v86_v1 = vld [vmem:[#allocation3 + $0x68] sm:$0xff]  ;;  %v88_v2 = vld [vmem:[#allocation3 + $0x78] sm:$0xff]  ;;  %vm111_vm0 = vcmask 261120  }
  0x27   :  { %200 = vmatprep.mubr.f32.mxu0 %v3445_v0  ;;  %313 = vmatprep.mubr.f32.mxu1 %v3445_v0  ;;  %v85_v3 = vld [vmem:[#allocation3 + $0x60] sm:$0xff]  ;;  %v87_v4 = vld [vmem:[#allocation3 + $0x70] sm:$0xff]  ;;  %v82_v5 = vld [vmem:[#allocation3 + $0x48] sm:$0xff]  ;;  %vm2380_vm1 = vmmov 0   ;;  %s2381_s7 = smov [#allocation9]  }
  0x28   :  { %160 = vmatprep.subr.mxu0 %v86_v1  ;;  %273 = vmatprep.subr.mxu1 %v88_v2  ;;  %v84_v6 = vld [vmem:[#allocation3 + $0x58] sm:$0xff]  ;;  %v81_v7 = vld [vmem:[#allocation3 + $0x40] sm:$0xff]  ;;  %v83_v8 = vld [vmem:[#allocation3 + $0x50] sm:$0xff]  ;;  %s1974_s8 = sshll.u32 %s2381_s7, 4  ;;  %s1975_s8 = int_to_ptr.vmem [resolvable:$true] %s1974_s8 }
  0x29   :  { %161 = vmatpush1.msra.mxu0 %v85_v3  ;;  %274 = vmatpush1.msra.mxu1 %v87_v4  ;;  %v78_v9 = vld [vmem:[#allocation3 + $0x28] sm:$0xff]  ;;  %v80_v10 = vld [vmem:[#allocation3 + $0x38] sm:$0xff]  ;;  %v77_v11 = vld [vmem:[#allocation3 + $0x20] sm:$0xff]  ;;  %s2346_s9 = scalar_lea.vmem %s1975_s8, 128  ;;  %p2351_p2 = scmp.lt.s32.totalorder %s1975_s8, %s1975_s8 }
  0x2a   :  { %162 = vmatprep.subr.mxu0 %v82_v5  ;;  %275 = vmatprep.subr.mxu1 %v84_v6  ;;  %v79_v12 = vld [vmem:[#allocation3 + $0x30] sm:$0xff]  ;;  %v74_v13 = vld [vmem:[#allocation3 + $0x8] sm:$0xff]  ;;  %v76_v14 = vld [vmem:[#allocation3 + $0x18] sm:$0xff]  ;;  %p2347_p1 = scmp.ne.s32.totalorder %s1975_s8, %s2346_s9  ;;  %p2352_p3 = scmp.lt.s32.totalorder %s2346_s9, %s2346_s9 }
  0x2b   :  { %163 = vmatpush1.msra.mxu0 %v81_v7  ;;  %276 = vmatpush1.msra.mxu1 %v83_v8  ;;  %v73_v15 = vld [vmem:[#allocation3] sm:$0xff]  ;;  %v75_v16 = vld [vmem:[#allocation3 + $0x10] sm:$0xff]  ;;  %v2431_v18 = vld [vmem:[#allocation6 + $0x1e8] sm:$0xff] }
  0x2c   :  { %164 = vmatprep.subr.mxu0 %v78_v9  ;;  %277 = vmatprep.subr.mxu1 %v80_v10  ;;  %v65_v17 = vld [vmem:[%s3438_s0] sm:$0xff]  ;;  %3533 = vst [vmem:[#allocation13_spill] sm:$0xff] %v2431_v18  ;;  %v2433_v19 = vld [vmem:[#allocation6 + $0x1f8] sm:$0xff]  ;;  %v2437_v21 = vld [vmem:[#allocation6 + $0x1f0] sm:$0xff]  ;;  %p2353_p4 = por %p2352_p3, %p2351_p2 }
  0x2d   :  { %165 = vmatpush1.msra.mxu0 %v77_v11  ;;  %278 = vmatpush1.msra.mxu1 %v79_v12  ;;  %3534 = vst [vmem:[#allocation14_spill] sm:$0xff] %v2433_v19  ;;  %v2435_v20 = vld [vmem:[#allocation6 + $0x1e0] sm:$0xff]  ;;  %v2441_v22 = vld [vmem:[#allocation6 + $0x1c8] sm:$0xff]  ;;  %v2443_v23 = vld [vmem:[#allocation6 + $0x1d8] sm:$0xff] }
  0x2e   :  { %166 = vmatprep.subr.mxu0 %v74_v13  ;;  %279 = vmatprep.subr.mxu1 %v76_v14  ;;  %v2449_v24 = vld [vmem:[#allocation6 + $0x1c0] sm:$0xff]  ;;  %v2451_v25 = vld [vmem:[#allocation6 + $0x1d0] sm:$0xff]  ;;  %v66_v26 = vld [vmem:[%s3438_s0 + $0x8] sm:$0xff]  ;;  %p2354_p5 = pnand %p2353_p4, %p2347_p1 }
  0x2f   :  { %167 = vmatpush1.msra.mxu0 %v73_v15  ;;  %280 = vmatpush1.msra.mxu1 %v75_v16  ;;  %v2460_v27 = vld [vmem:[#allocation6 + $0x1a8] sm:$0xff]  ;;  %v2462_v28 = vld [vmem:[#allocation6 + $0x1b8] sm:$0xff]  ;;  %v2466_v29 = vld [vmem:[#allocation6 + $0x1a0] sm:$0xff] }
  0x30   :  { %1991 = vmatmul.mubr.msk.f32.vlgmr.msra.gmra.mxu0 %vm111_vm0, %v65_v17  ;;  %1999 = vmatmul.mubr.msk.f32.vlgmr.msra.gmra.mxu1 %vm111_vm0, %v65_v17  ;;  %v2468_v30 = vld [vmem:[#allocation6 + $0x1b0] sm:$0xff]  ;;  %v2472_v31 = vld [vmem:[#allocation6 + $0x188] sm:$0xff]  ;;  %v2474_v32 = vld [vmem:[#allocation6 + $0x198] sm:$0xff] }
  0x31   :  { %465 = vmatprep.subr.mxu0 %v2431_v18  ;;  %536 = vmatprep.subr.mxu1 %v2433_v19  ;;  %v2480_v33 = vld [vmem:[#allocation6 + $0x180] sm:$0xff]  ;;  %v2482_v34 = vld [vmem:[#allocation6 + $0x190] sm:$0xff]  ;;  %v2491_v36 = vld [vmem:[#allocation6 + $0x168] sm:$0xff] }
  0x32   :  { %466 = vmatpush1.msra.mxu0 %v2435_v20  ;;  %537 = vmatpush1.msra.mxu1 %v2437_v21  ;;  %v67_v35 = vld [vmem:[%s3438_s0 + $0x10] sm:$0xff]  ;;  %v2493_v37 = vld [vmem:[#allocation6 + $0x178] sm:$0xff]  ;;  %v2497_v38 = vld [vmem:[#allocation6 + $0x160] sm:$0xff] }
  0x33   :  { %467 = vmatprep.subr.mxu0 %v2441_v22  ;;  %538 = vmatprep.subr.mxu1 %v2443_v23  ;;  %v2499_v39 = vld [vmem:[#allocation6 + $0x170] sm:$0xff]  ;;  %v2503_v40 = vld [vmem:[#allocation6 + $0x148] sm:$0xff]  ;;  %v2505_v41 = vld [vmem:[#allocation6 + $0x158] sm:$0xff] }
  0x34   :  { %206 = vmatprep.mubr.f32.mxu0 %v3445_v0  ;;  %319 = vmatprep.mubr.f32.mxu1 %v3445_v0  ;;  %v2511_v42 = vld [vmem:[#allocation6 + $0x140] sm:$0xff]  ;;  %v2513_v43 = vld [vmem:[#allocation6 + $0x150] sm:$0xff]  ;;  %v68_v44 = vld [vmem:[%s3438_s0 + $0x18] sm:$0xff] }
  0x35   :  { %468 = vmatpush1.msra.mxu0 %v2449_v24  ;;  %539 = vmatpush1.msra.mxu1 %v2451_v25  ;;  %v2522_v45 = vld [vmem:[#allocation6 + $0x128] sm:$0xff]  ;;  %v2524_v46 = vld [vmem:[#allocation6 + $0x138] sm:$0xff]  ;;  %v2528_v47 = vld [vmem:[#allocation6 + $0x120] sm:$0xff] }
  0x36   :  { %1992 = vmatmul.mubr.msk.f32.gmra.mxu0 %vm111_vm0, %v66_v26  ;;  %2000 = vmatmul.mubr.msk.f32.gmra.mxu1 %vm111_vm0, %v66_v26  ;;  %v2530_v48 = vld [vmem:[#allocation6 + $0x130] sm:$0xff]  ;;  %v2534_v49 = vld [vmem:[#allocation6 + $0x108] sm:$0xff]  ;;  %v2536_v50 = vld [vmem:[#allocation6 + $0x118] sm:$0xff] }
  0x37   :  { %469 = vmatprep.subr.mxu0 %v2460_v27  ;;  %540 = vmatprep.subr.mxu1 %v2462_v28  ;;  %v2542_v51 = vld [vmem:[#allocation6 + $0x100] sm:$0xff]  ;;  %v2544_v52 = vld [vmem:[#allocation6 + $0x110] sm:$0xff]  ;;  %v2553_v54 = vld [vmem:[#allocation6 + $0xe8] sm:$0xff] }
  0x38   :  { %470 = vmatpush1.msra.mxu0 %v2466_v29  ;;  %541 = vmatpush1.msra.mxu1 %v2468_v30  ;;  %v69_v53 = vld [vmem:[%s3438_s0 + $0x20] sm:$0xff]  ;;  %v2555_v55 = vld [vmem:[#allocation6 + $0xf8] sm:$0xff]  ;;  %v2561_v57 = vld [vmem:[#allocation6 + $0xf0] sm:$0xff] }
  0x39   :  { %471 = vmatprep.subr.mxu0 %v2472_v31  ;;  %542 = vmatprep.subr.mxu1 %v2474_v32  ;;  %v2559_v56 = vld [vmem:[#allocation6 + $0xe0] sm:$0xff]  ;;  %v2565_v58 = vld [vmem:[#allocation6 + $0xc8] sm:$0xff]  ;;  %v2567_v59 = vld [vmem:[#allocation6 + $0xd8] sm:$0xff] }
  0x3a   :  { %212 = vmatprep.mubr.f32.mxu0 %v3445_v0  ;;  %325 = vmatprep.mubr.f32.mxu1 %v3445_v0  ;;  %v2573_v60 = vld [vmem:[#allocation6 + $0xc0] sm:$0xff]  ;;  %v2575_v61 = vld [vmem:[#allocation6 + $0xd0] sm:$0xff]  ;;  %v70_v62 = vld [vmem:[%s3438_s0 + $0x28] sm:$0xff] }
  0x3b   :  { %472 = vmatpush1.msra.mxu0 %v2480_v33  ;;  %543 = vmatpush1.msra.mxu1 %v2482_v34  ;;  %v2584_v63 = vld [vmem:[#allocation6 + $0xa8] sm:$0xff]  ;;  %v2586_v1 = vld [vmem:[#allocation6 + $0xb8] sm:$0xff]  ;;  %v2590_v2 = vld [vmem:[#allocation6 + $0xa0] sm:$0xff] }
  0x3c   :  { %1993 = vmatmul.mubr.msk.f32.gmra.mxu0 %vm111_vm0, %v67_v35  ;;  %2001 = vmatmul.mubr.msk.f32.gmra.mxu1 %vm111_vm0, %v67_v35  ;;  %v2592_v3 = vld [vmem:[#allocation6 + $0xb0] sm:$0xff]  ;;  %v2596_v4 = vld [vmem:[#allocation6 + $0x88] sm:$0xff]  ;;  %v2598_v5 = vld [vmem:[#allocation6 + $0x98] sm:$0xff] }
  0x3d   :  { %473 = vmatprep.subr.mxu0 %v2491_v36  ;;  %544 = vmatprep.subr.mxu1 %v2493_v37  ;;  %3535 = vst [vmem:[#allocation15_spill] sm:$0xff] %v2596_v4  ;;  %3536 = vst [vmem:[#allocation16_spill] sm:$0xff] %v2598_v5  ;;  %v2604_v6 = vld [vmem:[#allocation6 + $0x80] sm:$0xff]  ;;  %v2606_v7 = vld [vmem:[#allocation6 + $0x90] sm:$0xff] }
  0x3e   :  { %474 = vmatpush1.msra.mxu0 %v2497_v38  ;;  %545 = vmatpush1.msra.mxu1 %v2499_v39  ;;  %3537 = vst [vmem:[#allocation17_spill] sm:$0xff] %v2604_v6  ;;  %3538 = vst [vmem:[#allocation18_spill] sm:$0xff] %v2606_v7  ;;  %v71_v8 = vld [vmem:[%s3438_s0 + $0x30] sm:$0xff]  ;;  %v2615_v9 = vld [vmem:[#allocation6 + $0x68] sm:$0xff] }
  0x3f   :  { %475 = vmatprep.subr.mxu0 %v2503_v40  ;;  %546 = vmatprep.subr.mxu1 %v2505_v41  ;;  %3539 = vst [vmem:[#allocation19_spill] sm:$0xff] %v2615_v9  ;;  %v2617_v10 = vld [vmem:[#allocation6 + $0x78] sm:$0xff]  ;;  %v2621_v11 = vld [vmem:[#allocation6 + $0x60] sm:$0xff]  ;;  %v2623_v12 = vld [vmem:[#allocation6 + $0x70] sm:$0xff] }
  0x40   :  { %218 = vmatprep.mubr.f32.mxu0 %v3445_v0  ;;  %331 = vmatprep.mubr.f32.mxu1 %v3445_v0  ;;  %3540 = vst [vmem:[#allocation20_spill] sm:$0xff] %v2617_v10  ;;  %3541 = vst [vmem:[#allocation21_spill] sm:$0xff] %v2621_v11  ;;  %v2627_v13 = vld [vmem:[#allocation6 + $0x48] sm:$0xff]  ;;  %v2629_v14 = vld [vmem:[#allocation6 + $0x58] sm:$0xff] }
  0x41   :  { %476 = vmatpush1.msra.mxu0 %v2511_v42  ;;  %547 = vmatpush1.msra.mxu1 %v2513_v43  ;;  %3542 = vst [vmem:[#allocation22_spill] sm:$0xff] %v2623_v12  ;;  %3543 = vst [vmem:[#allocation23_spill] sm:$0xff] %v2627_v13  ;;  %v2635_v15 = vld [vmem:[#allocation6 + $0x40] sm:$0xff]  ;;  %v2637_v16 = vld [vmem:[#allocation6 + $0x50] sm:$0xff] }
  0x42   :  { %1994 = vmatmul.mubr.msk.f32.gmra.mxu0 %vm111_vm0, %v68_v44  ;;  %2002 = vmatmul.mubr.msk.f32.gmra.mxu1 %vm111_vm0, %v68_v44  ;;  %3544 = vst [vmem:[#allocation24_spill] sm:$0xff] %v2629_v14  ;;  %3545 = vst [vmem:[#allocation25_spill] sm:$0xff] %v2635_v15  ;;  %v72_v17 = vld [vmem:[%s3438_s0 + $0x38] sm:$0xff]  ;;  %v2646_v26 = vld [vmem:[#allocation6 + $0x28] sm:$0xff] }
  0x43   :  { %477 = vmatprep.subr.mxu0 %v2522_v45  ;;  %548 = vmatprep.subr.mxu1 %v2524_v46  ;;  %3546 = vst [vmem:[#allocation26_spill] sm:$0xff] %v2637_v16  ;;  %3547 = vst [vmem:[#allocation27_spill] sm:$0xff] %v2646_v26  ;;  %v2648_v35 = vld [vmem:[#allocation6 + $0x38] sm:$0xff]  ;;  %v2652_v44 = vld [vmem:[#allocation6 + $0x20] sm:$0xff] }
  0x44   :  { %478 = vmatpush1.msra.mxu0 %v2528_v47  ;;  %549 = vmatpush1.msra.mxu1 %v2530_v48  ;;  %3548 = vst [vmem:[#allocation28_spill] sm:$0xff] %v2648_v35  ;;  %3549 = vst [vmem:[#allocation29_spill] sm:$0xff] %v2652_v44 }
  0x45   :  { %479 = vmatprep.subr.mxu0 %v2534_v49  ;;  %550 = vmatprep.subr.mxu1 %v2536_v50 }
  0x46   :  { %224 = vmatprep.mubr.f32.mxu0 %v3445_v0  ;;  %337 = vmatprep.mubr.f32.mxu1 %v3445_v0 }
  0x47   :  { %480 = vmatpush1.msra.mxu0 %v2542_v51  ;;  %551 = vmatpush1.msra.mxu1 %v2544_v52 }
  0x48   :  { %1995 = vmatmul.mubr.msk.f32.gmra.mxu0 %vm111_vm0, %v69_v53  ;;  %2003 = vmatmul.mubr.msk.f32.gmra.mxu1 %vm111_vm0, %v69_v53  ;;  %v2654_v53 = vld [vmem:[#allocation6 + $0x30] sm:$0xff] }
  0x49   :  { %481 = vmatprep.subr.mxu0 %v2553_v54  ;;  %552 = vmatprep.subr.mxu1 %v2555_v55  ;;  %3550 = vst [vmem:[#allocation30_spill] sm:$0xff] %v2654_v53 }
  0x4a   :  { %482 = vmatpush1.msra.mxu0 %v2559_v56  ;;  %553 = vmatpush1.msra.mxu1 %v2561_v57 }
  0x4b   :  { %483 = vmatprep.subr.mxu0 %v2565_v58  ;;  %554 = vmatprep.subr.mxu1 %v2567_v59 }
  0x4c   :  { %230 = vmatprep.mubr.f32.mxu0 %v3445_v0  ;;  %343 = vmatprep.mubr.f32.mxu1 %v3445_v0 }
  0x4d   :  { %484 = vmatpush1.msra.mxu0 %v2573_v60  ;;  %555 = vmatpush1.msra.mxu1 %v2575_v61 }
  0x4e   :  { %1996 = vmatmul.mubr.msk.f32.gmra.mxu0 %vm111_vm0, %v70_v62  ;;  %2004 = vmatmul.mubr.msk.f32.gmra.mxu1 %vm111_vm0, %v70_v62  ;;  %v2658_v62 = vld [vmem:[#allocation6 + $0x8] sm:$0xff] }
  0x4f   :  { %485 = vmatprep.subr.mxu0 %v2584_v63  ;;  %556 = vmatprep.subr.mxu1 %v2586_v1  ;;  %3551 = vst [vmem:[#allocation31_spill] sm:$0xff] %v2658_v62 }
  0x50   :  { %486 = vmatpush1.msra.mxu0 %v2590_v2  ;;  %557 = vmatpush1.msra.mxu1 %v2592_v3 }
  0x51   :  { %487 = vmatprep.subr.mxu0 %v2596_v4  ;;  %558 = vmatprep.subr.mxu1 %v2598_v5 }
  0x52   :  { %236 = vmatprep.mubr.f32.mxu0 %v3445_v0  ;;  %349 = vmatprep.mubr.f32.mxu1 %v3445_v0 }
  0x53   :  { %488 = vmatpush1.msra.mxu0 %v2604_v6  ;;  %559 = vmatpush1.msra.mxu1 %v2606_v7 }
  0x54   :  { %1997 = vmatmul.mubr.msk.f32.gmra.mxu0 %vm111_vm0, %v71_v8  ;;  %2005 = vmatmul.mubr.msk.f32.gmra.mxu1 %vm111_vm0, %v71_v8  ;;  %v2660_v8 = vld [vmem:[#allocation6 + $0x18] sm:$0xff] }
  0x55   :  { %489 = vmatprep.subr.mxu0 %v2615_v9  ;;  %560 = vmatprep.subr.mxu1 %v2617_v10  ;;  %3552 = vst [vmem:[#allocation32_spill] sm:$0xff] %v2660_v8 }
  0x56   :  { %490 = vmatpush1.msra.mxu0 %v2621_v11  ;;  %561 = vmatpush1.msra.mxu1 %v2623_v12 }
  0x57   :  { %491 = vmatprep.subr.mxu0 %v2627_v13  ;;  %562 = vmatprep.subr.mxu1 %v2629_v14 }
  0x58   :  { %242 = vmatprep.mubr.f32.mxu0 %v3445_v0  ;;  %355 = vmatprep.mubr.f32.mxu1 %v3445_v0  ;;  %v2664_v0 = vld [vmem:[#allocation6] sm:$0xff] }
  0x59   :  { %492 = vmatpush1.msra.mxu0 %v2635_v15  ;;  %563 = vmatpush1.msra.mxu1 %v2637_v16  ;;  %3553 = vst [vmem:[#allocation33_spill] sm:$0xff] %v2664_v0  ;;  %v2668_v16 = vld [vmem:[#allocation6 + $0x10] sm:$0xff] }
  0x5a   :  { %1998 = vmatmul.mubr.msk.f32.gmra.mxu0 %vm111_vm0, %v72_v17  ;;  %2006 = vmatmul.mubr.msk.f32.gmra.mxu1 %vm111_vm0, %v72_v17  ;;  %3554 = vst [vmem:[#allocation34_spill] sm:$0xff] %v2668_v16  ;;  %v3555_v17 = vmov 0.0  }
  0x5b   :  { %493 = vmatprep.subr.mxu0 %v2646_v26  ;;  %564 = vmatprep.subr.mxu1 %v2648_v35 }
  0x5c   :  { %494 = vmatpush1.msra.mxu0 %v2652_v44  ;;  %565 = vmatpush1.msra.mxu1 %v2654_v53 }
  0x5d   :  { %495 = vmatprep.subr.mxu0 %v2658_v62  ;;  %566 = vmatprep.subr.mxu1 %v2660_v8 }
  0x5e   :  { %496 = vmatpush1.msra.mxu0 %v2664_v0  ;;  %529 = vmatprep.mubr.f32.mxu0 %v3555_v17 }
  0x5f   :  { %567 = vmatpush1.msra.mxu1 %v2668_v16  ;;  %600 = vmatprep.mubr.f32.mxu1 %v3555_v17 }
  0x60   :  { %530 = vmatmul.mubr.f32.vlgmr.msra.gmra.mxu0 %v3555_v17  ;;  %601 = vmatmul.mubr.f32.vlgmr.msra.gmra.mxu1 %v3555_v17 }
  0x61   :  { %642 = vmatprep.subr.mxu0 %v2431_v18  ;;  %713 = vmatprep.subr.mxu1 %v2433_v19 }
  0x62   :  { %643 = vmatpush1.msra.mxu0 %v2435_v20  ;;  %714 = vmatpush1.msra.mxu1 %v2437_v21 }
  0x63   :  { %644 = vmatprep.subr.mxu0 %v2441_v22  ;;  %715 = vmatprep.subr.mxu1 %v2443_v23 }
  0x64   :  { %645 = vmatpush1.msra.mxu0 %v2449_v24  ;;  %716 = vmatpush1.msra.mxu1 %v2451_v25 }
  0x65   :  { %646 = vmatprep.subr.mxu0 %v2460_v27  ;;  %717 = vmatprep.subr.mxu1 %v2462_v28 }
  0x66   :  { %647 = vmatpush1.msra.mxu0 %v2466_v29  ;;  %718 = vmatpush1.msra.mxu1 %v2468_v30 }
  0x67   :  { %648 = vmatprep.subr.mxu0 %v2472_v31  ;;  %719 = vmatprep.subr.mxu1 %v2474_v32 }
  0x68   :  { %649 = vmatpush1.msra.mxu0 %v2480_v33  ;;  %720 = vmatpush1.msra.mxu1 %v2482_v34 }
  0x69   :  { %650 = vmatprep.subr.mxu0 %v2491_v36  ;;  %721 = vmatprep.subr.mxu1 %v2493_v37 }
  0x6a   :  { %651 = vmatpush1.msra.mxu0 %v2497_v38  ;;  %722 = vmatpush1.msra.mxu1 %v2499_v39 }
  0x6b   :  { %652 = vmatprep.subr.mxu0 %v2503_v40  ;;  %723 = vmatprep.subr.mxu1 %v2505_v41 }
  0x6c   :  { %653 = vmatpush1.msra.mxu0 %v2511_v42  ;;  %724 = vmatpush1.msra.mxu1 %v2513_v43 }
  0x6d   :  { %654 = vmatprep.subr.mxu0 %v2522_v45  ;;  %725 = vmatprep.subr.mxu1 %v2524_v46 }
  0x6e   :  { %655 = vmatpush1.msra.mxu0 %v2528_v47  ;;  %726 = vmatpush1.msra.mxu1 %v2530_v48 }
  0x6f   :  { %656 = vmatprep.subr.mxu0 %v2534_v49  ;;  %727 = vmatprep.subr.mxu1 %v2536_v50 }
  0x70   :  { %657 = vmatpush1.msra.mxu0 %v2542_v51  ;;  %728 = vmatpush1.msra.mxu1 %v2544_v52 }
  0x71   :  { %658 = vmatprep.subr.mxu0 %v2553_v54  ;;  %729 = vmatprep.subr.mxu1 %v2555_v55 }
  0x72   :  { %659 = vmatpush1.msra.mxu0 %v2559_v56  ;;  %730 = vmatpush1.msra.mxu1 %v2561_v57 }
  0x73   :  { %660 = vmatprep.subr.mxu0 %v2565_v58  ;;  %731 = vmatprep.subr.mxu1 %v2567_v59 }
  0x74   :  { %661 = vmatpush1.msra.mxu0 %v2573_v60  ;;  %732 = vmatpush1.msra.mxu1 %v2575_v61 }
  0x75   :  { %662 = vmatprep.subr.mxu0 %v2584_v63  ;;  %733 = vmatprep.subr.mxu1 %v2586_v1 }
  0x76   :  { %663 = vmatpush1.msra.mxu0 %v2590_v2  ;;  %734 = vmatpush1.msra.mxu1 %v2592_v3 }
  0x77   :  { %664 = vmatprep.subr.mxu0 %v2596_v4  ;;  %735 = vmatprep.subr.mxu1 %v2598_v5  ;;  %v3556_v4 = vld [vmem:[#allocation26_spill] sm:$0xff] }
  0x78   :  { %665 = vmatpush1.msra.mxu0 %v2604_v6  ;;  %736 = vmatpush1.msra.mxu1 %v2606_v7 }
  0x79   :  { %666 = vmatprep.subr.mxu0 %v2615_v9  ;;  %737 = vmatprep.subr.mxu1 %v2617_v10 }
  0x7a   :  { %667 = vmatpush1.msra.mxu0 %v2621_v11  ;;  %738 = vmatpush1.msra.mxu1 %v2623_v12 }
  0x7b   :  { %668 = vmatprep.subr.mxu0 %v2627_v13  ;;  %739 = vmatprep.subr.mxu1 %v2629_v14 }
  0x7c   :  { %669 = vmatpush1.msra.mxu0 %v2635_v15  ;;  %740 = vmatpush1.msra.mxu1 %v3556_v4 }
  0x7d   :  { %670 = vmatprep.subr.mxu0 %v2646_v26  ;;  %741 = vmatprep.subr.mxu1 %v2648_v35  ;;  %v91_v35 = vlaneseq }
  0x7e   :  { %671 = vmatpush1.msra.mxu0 %v2652_v44  ;;  %742 = vmatpush1.msra.mxu1 %v2654_v53 }
  0x7f   :  { %672 = vmatprep.subr.mxu0 %v2658_v62  ;;  %743 = vmatprep.subr.mxu1 %v2660_v8  ;;  %v92_v44 = vshrl.u32 %v91_v35, 7 }
  0x80   :  { %673 = vmatpush1.msra.mxu0 %v2664_v0  ;;  %706 = vmatprep.mubr.f32.mxu0 %v3555_v17  ;;  %v89_v0 = vld [vmem:[%s3441_s3] sm:$0xf] }
  0x81   :  { %744 = vmatpush1.msra.mxu1 %v2668_v16  ;;  %777 = vmatprep.mubr.f32.mxu1 %v3555_v17  ;;  %v93_v62 = vsub.s32 0, %v92_v44  ;;  %v101_v8 = vsub.s32 2, %v92_v44  ;;  %v97_v17 = vsub.s32 1, %v92_v44 }
  0x82   :  { %819 = vmatprep.subr.mxu0 %v2431_v18  ;;  %890 = vmatprep.subr.mxu1 %v2433_v19  ;;  %v105_v18 = vsub.s32 3, %v92_v44 }
  0x83   :  { %v94_v15 = vrot.slane %v89_v0, %v93_v62  ;;  %v2757_v19 = vrot.slane %v89_v0, %v101_v8  ;;  %v98_v13 = vrot.slane %v89_v0, %v97_v17 }
  0x84   :  { %v2759_v12 = vrot.slane %v89_v0, %v105_v18 }
  0xf0   :  { %v2746_v26 = vpop.f32.mrf.mxu0  ;;  %v2748_v53 = vpop.f32.mrf.mxu1 }
  0xf2   :  { %v2753_v4 = vpop.f32.mrf.mxu0  ;;  %v2755_v16 = vpop.f32.mrf.mxu1 }
  0xf6   :  { %v208_v35 = vpop.f32.mrf.mxu0  ;;  %v321_v14 = vpop.f32.mrf.mxu1 }
  0xf7   :  { %v2761_v11 = vadd.f32 %v208_v35, %v94_v15  ;;  %v2764_v10 = vadd.f32 %v321_v14, %v2757_v19 }
  0xf8   :  { %v210_v9 = vpop.f32.mrf.mxu0  ;;  %v323_v7 = vpop.f32.mrf.mxu1 }
  0xf9   :  { %3557 = vst [vmem:[#allocation35_spill] sm:$0xff] %v2761_v11  ;;  %3558 = vst [vmem:[#allocation36_spill] sm:$0xff] %v2764_v10  ;;  %v2766_v6 = vadd.f32 %v210_v9, %v98_v13  ;;  %v2769_v5 = vadd.f32 %v323_v7, %v2759_v12 }
  0xfb   :  { %3559 = vst [vmem:[#allocation37_spill] sm:$0xff] %v2766_v6  ;;  %3560 = vst [vmem:[#allocation38_spill] sm:$0xff] %v2769_v5 }
  0xfc   :  { %v214_v44 = vpop.f32.mrf.mxu0  ;;  %v327_v62 = vpop.f32.mrf.mxu1 }
  0xfd   :  { %v2771_v8 = vadd.f32 %v214_v44, %v94_v15  ;;  %v2774_v17 = vadd.f32 %v327_v62, %v2757_v19 }
  0xfe   :  { %v216_v0 = vpop.f32.mrf.mxu0  ;;  %v329_v18 = vpop.f32.mrf.mxu1 }
  0xff   :  { %3561 = vst [vmem:[#allocation39_spill] sm:$0xff] %v2771_v8  ;;  %3562 = vst [vmem:[#allocation40_spill] sm:$0xff] %v2774_v17  ;;  %v2776_v35 = vadd.f32 %v216_v0, %v98_v13  ;;  %v2779_v14 = vadd.f32 %v329_v18, %v2759_v12 }
 0x101   :  { %3563 = vst [vmem:[#allocation41_spill] sm:$0xff] %v2776_v35  ;;  %3564 = vst [vmem:[#allocation42_spill] sm:$0xff] %v2779_v14 }
 0x102   :  { %v220_v10 = vpop.f32.mrf.mxu0  ;;  %v333_v9 = vpop.f32.mrf.mxu1 }
 0x103   :  { %v2781_v6 = vadd.f32 %v220_v10, %v94_v15  ;;  %v2784_v7 = vadd.f32 %v333_v9, %v2757_v19 }
 0x104   :  { %v222_v5 = vpop.f32.mrf.mxu0  ;;  %v335_v44 = vpop.f32.mrf.mxu1 }
 0x105   :  { %3565 = vst [vmem:[#allocation43_spill] sm:$0xff] %v2781_v6  ;;  %3566 = vst [vmem:[#allocation44_spill] sm:$0xff] %v2784_v7  ;;  %v2786_v8 = vadd.f32 %v222_v5, %v98_v13  ;;  %v2789_v62 = vadd.f32 %v335_v44, %v2759_v12 }
 0x107   :  { %3567 = vst [vmem:[#allocation45_spill] sm:$0xff] %v2786_v8  ;;  %3568 = vst [vmem:[#allocation46_spill] sm:$0xff] %v2789_v62 }
 0x108   :  { %v226_v17 = vpop.f32.mrf.mxu0  ;;  %v339_v0 = vpop.f32.mrf.mxu1 }
 0x109   :  { %v2791_v35 = vadd.f32 %v226_v17, %v94_v15  ;;  %v2794_v18 = vadd.f32 %v339_v0, %v2757_v19 }
 0x10a   :  { %v228_v14 = vpop.f32.mrf.mxu0  ;;  %v341_v10 = vpop.f32.mrf.mxu1 }
 0x10b   :  { %3569 = vst [vmem:[#allocation47_spill] sm:$0xff] %v2791_v35  ;;  %3570 = vst [vmem:[#allocation48_spill] sm:$0xff] %v2794_v18  ;;  %v2796_v6 = vadd.f32 %v228_v14, %v98_v13  ;;  %v2799_v9 = vadd.f32 %v341_v10, %v2759_v12 }
 0x10d   :  { %3571 = vst [vmem:[#allocation49_spill] sm:$0xff] %v2796_v6  ;;  %3572 = vst [vmem:[#allocation50_spill] sm:$0xff] %v2799_v9 }
 0x10e   :  { %v232_v7 = vpop.f32.mrf.mxu0  ;;  %v345_v5 = vpop.f32.mrf.mxu1 }
 0x10f   :  { %v2801_v8 = vadd.f32 %v232_v7, %v94_v15  ;;  %v2804_v44 = vadd.f32 %v345_v5, %v2757_v19 }
 0x110   :  { %v234_v62 = vpop.f32.mrf.mxu0  ;;  %v347_v17 = vpop.f32.mrf.mxu1 }
 0x111   :  { %3573 = vst [vmem:[#allocation51_spill] sm:$0xff] %v2801_v8  ;;  %3574 = vst [vmem:[#allocation52_spill] sm:$0xff] %v2804_v44  ;;  %v2806_v35 = vadd.f32 %v234_v62, %v98_v13  ;;  %v2809_v0 = vadd.f32 %v347_v17, %v2759_v12 }
 0x113   :  { %3575 = vst [vmem:[#allocation53_spill] sm:$0xff] %v2806_v35  ;;  %3576 = vst [vmem:[#allocation54_spill] sm:$0xff] %v2809_v0 }
 0x114   :  { %v238_v18 = vpop.f32.mrf.mxu0  ;;  %v351_v14 = vpop.f32.mrf.mxu1 }
 0x115   :  { %v2811_v6 = vadd.f32 %v238_v18, %v94_v15  ;;  %v2814_v10 = vadd.f32 %v351_v14, %v2757_v19 }
 0x116   :  { %v240_v9 = vpop.f32.mrf.mxu0  ;;  %v353_v7 = vpop.f32.mrf.mxu1 }
 0x117   :  { %3577 = vst [vmem:[#allocation55_spill] sm:$0xff] %v2811_v6  ;;  %3578 = vst [vmem:[#allocation56_spill] sm:$0xff] %v2814_v10  ;;  %v2816_v8 = vadd.f32 %v240_v9, %v98_v13  ;;  %v2819_v5 = vadd.f32 %v353_v7, %v2759_v12  ;;  %v203_v9 = vadd.f32 %v2746_v26, %v94_v15 }
 0x118   :  { %v205_v7 = vadd.f32 %v2753_v4, %v98_v13 }
 0x119   :  { %3579 = vst [vmem:[#allocation57_spill] sm:$0xff] %v2816_v8  ;;  %3580 = vst [vmem:[#allocation58_spill] sm:$0xff] %v2819_v5 }
 0x11a   :  { %v244_v44 = vpop.f32.mrf.mxu0  ;;  %v357_v62 = vpop.f32.mrf.mxu1 }
 0x11b   :  { %v2821_v35 = vadd.f32 %v244_v44, %v94_v15  ;;  %v2824_v17 = vadd.f32 %v357_v62, %v2757_v19 }
 0x11c   :  { %v246_v0 = vpop.f32.mrf.mxu0  ;;  %v359_v18 = vpop.f32.mrf.mxu1 }
 0x11d   :  { %3581 = vst [vmem:[#allocation59_spill] sm:$0xff] %v2821_v35  ;;  %3582 = vst [vmem:[#allocation60_spill] sm:$0xff] %v2824_v17  ;;  %v2826_v6 = vadd.f32 %v246_v0, %v98_v13  ;;  %v2829_v14 = vadd.f32 %v359_v18, %v2759_v12  ;;  %v318_v0 = vadd.f32 %v2755_v16, %v2759_v12 }
 0x11e   :  { %v316_v18 = vadd.f32 %v2748_v53, %v2757_v19 }
 0x11f   :  { %3583 = vst [vmem:[#allocation61_spill] sm:$0xff] %v2826_v6  ;;  %3584 = vst [vmem:[#allocation62_spill] sm:$0xff] %v2829_v14 }
 0x120   :  { %v531_v10 = vpop.f32.mrf.mxu0  ;;  %v602_v35 = vpop.f32.mrf.mxu1 }
 0x121   :  { %v607_v5 = vadd.f32 %v531_v10, %v203_v9  ;;  %v609_v14 = vadd.f32 %v602_v35, %v316_v18  ;;  %v3585_v35 = vld [vmem:[#allocation15_spill] sm:$0xff]  ;;  %v3590_v18 = vld [vmem:[#allocation20_spill] sm:$0xff] }
 0x122   :  { %v533_v8 = vpop.f32.mrf.mxu0  ;;  %v604_v17 = vpop.f32.mrf.mxu1 }
 0x123   :  { %v2007_v11 = vmul.f32 -1.442695, %v607_v5  ;;  %v608_v44 = vadd.f32 %v533_v8, %v205_v7  ;;  %v610_v6 = vadd.f32 %v604_v17, %v318_v0  ;;  %v3589_v0 = vld [vmem:[#allocation19_spill] sm:$0xff] }
 0x125   :  { %2094 = vpow2.f32 %v2007_v11  ;;  %v2008_v62 = vmul.f32 -1.442695, %v608_v44  ;;  %v2009_v15 = vmul.f32 -1.442695, %v610_v6  ;;  %v3587_v44 = vld [vmem:[#allocation17_spill] sm:$0xff] }
 0x127   :  { %2096 = vpow2.f32 %v2008_v62  ;;  %v3588_v62 = vld [vmem:[#allocation18_spill] sm:$0xff] }
 0x128   :  { %2098 = vpow2.f32 %v2009_v15  ;;  %v3591_v15 = vld [vmem:[#allocation21_spill] sm:$0xff] }
 0x132   :  { %v2095_v26 = vpop.eup %2094 }
 0x133   :  { %v614_v4 = vadd.f32 1.0, %v2095_v26  ;;  %v3592_v26 = vld [vmem:[#allocation22_spill] sm:$0xff] }
 0x134   :  { %v2097_v13 = vpop.eup %2096 }
 0x135   :  { %2100 = vrcp.f32 %v614_v4  ;;  %v620_v8 = vadd.f32 1.0, %v2097_v13  ;;  %v2099_v11 = vpop.eup %2098  ;;  %v3593_v4 = vld [vmem:[#allocation23_spill] sm:$0xff]  ;;  %v3594_v13 = vld [vmem:[#allocation24_spill] sm:$0xff] }
 0x136   :  { %2102 = vtanh.f32 %v609_v14  ;;  %v627_v7 = vadd.f32 1.0, %v2099_v11  ;;  %v3586_v14 = vld [vmem:[#allocation16_spill] sm:$0xff]  ;;  %v3596_v11 = vld [vmem:[#allocation26_spill] sm:$0xff] }
 0x137   :  { %2104 = vrcp.f32 %v620_v8  ;;  %v3595_v8 = vld [vmem:[#allocation25_spill] sm:$0xff] }
 0x138   :  { %2106 = vrcp.f32 %v627_v7  ;;  %v3600_v7 = vld [vmem:[#allocation30_spill] sm:$0xff] }
 0x142   :  { %v2101_v10 = vpop.eup %2100 }
 0x143   :  { %v2103_v5 = vpop.eup %2102 }
 0x144   :  { %v2105_v9 = vpop.eup %2104  ;;  %v631_v16 = vmul.f32 %v2103_v5, %v2101_v10  ;;  %v3597_v10 = vld [vmem:[#allocation27_spill] sm:$0xff]  ;;  %v3598_v5 = vld [vmem:[#allocation28_spill] sm:$0xff] }
 0x145   :  { %v630_v12 = vmul.f32 0.0, %v2105_v9  ;;  %v2107_v19 = vpop.eup %2106  ;;  %v3599_v9 = vld [vmem:[#allocation29_spill] sm:$0xff] }
 0x147   :  { %v2837_v17 = vadd.f32 %v631_v16, %v630_v12  ;;  %v3601_v12 = vld [vmem:[#allocation31_spill] sm:$0xff]  ;;  %v3602_v16 = vld [vmem:[#allocation32_spill] sm:$0xff] }
 0x149   :  { %2108 = vtanh.f32 %v2837_v17 }
 0x156   :  { %v2109_v6 = vpop.eup %2108 }
 0x157   :  { %v634_v53 = vmul.f32 %v2109_v6, %v2107_v19  ;;  %v3603_v19 = vld [vmem:[#allocation33_spill] sm:$0xff]  ;;  %v3604_v6 = vmov 0.0  }
 0x159   :  { %707 = vmatmul.mubr.f32.vlgmr.msra.gmra.mxu0 %v634_v53  ;;  %778 = vmatmul.mubr.f32.vlgmr.msra.gmra.mxu1 %v634_v53  ;;  %v3605_v53 = vld [vmem:[#allocation34_spill] sm:$0xff] }
 0x15a   :  { %820 = vmatpush1.msra.mxu0 %v2435_v20  ;;  %891 = vmatpush1.msra.mxu1 %v2437_v21 }
 0x15b   :  { %821 = vmatprep.subr.mxu0 %v2441_v22  ;;  %892 = vmatprep.subr.mxu1 %v2443_v23 }
 0x15c   :  { %822 = vmatpush1.msra.mxu0 %v2449_v24  ;;  %893 = vmatpush1.msra.mxu1 %v2451_v25 }
 0x15d   :  { %823 = vmatprep.subr.mxu0 %v2460_v27  ;;  %894 = vmatprep.subr.mxu1 %v2462_v28 }
 0x15e   :  { %824 = vmatpush1.msra.mxu0 %v2466_v29  ;;  %895 = vmatpush1.msra.mxu1 %v2468_v30 }
 0x15f   :  { %825 = vmatprep.subr.mxu0 %v2472_v31  ;;  %896 = vmatprep.subr.mxu1 %v2474_v32 }
 0x160   :  { %826 = vmatpush1.msra.mxu0 %v2480_v33  ;;  %897 = vmatpush1.msra.mxu1 %v2482_v34 }
 0x161   :  { %827 = vmatprep.subr.mxu0 %v2491_v36  ;;  %898 = vmatprep.subr.mxu1 %v2493_v37 }
 0x162   :  { %828 = vmatpush1.msra.mxu0 %v2497_v38  ;;  %899 = vmatpush1.msra.mxu1 %v2499_v39 }
 0x163   :  { %829 = vmatprep.subr.mxu0 %v2503_v40  ;;  %900 = vmatprep.subr.mxu1 %v2505_v41 }
 0x164   :  { %830 = vmatpush1.msra.mxu0 %v2511_v42  ;;  %901 = vmatpush1.msra.mxu1 %v2513_v43 }
 0x165   :  { %831 = vmatprep.subr.mxu0 %v2522_v45  ;;  %902 = vmatprep.subr.mxu1 %v2524_v46 }
 0x166   :  { %832 = vmatpush1.msra.mxu0 %v2528_v47  ;;  %903 = vmatpush1.msra.mxu1 %v2530_v48 }
 0x167   :  { %833 = vmatprep.subr.mxu0 %v2534_v49  ;;  %904 = vmatprep.subr.mxu1 %v2536_v50 }
 0x168   :  { %834 = vmatpush1.msra.mxu0 %v2542_v51  ;;  %905 = vmatpush1.msra.mxu1 %v2544_v52 }
 0x169   :  { %835 = vmatprep.subr.mxu0 %v2553_v54  ;;  %906 = vmatprep.subr.mxu1 %v2555_v55 }
 0x16a   :  { %836 = vmatpush1.msra.mxu0 %v2559_v56  ;;  %907 = vmatpush1.msra.mxu1 %v2561_v57 }
 0x16b   :  { %837 = vmatprep.subr.mxu0 %v2565_v58  ;;  %908 = vmatprep.subr.mxu1 %v2567_v59 }
 0x16c   :  { %838 = vmatpush1.msra.mxu0 %v2573_v60  ;;  %909 = vmatpush1.msra.mxu1 %v2575_v61 }
 0x16d   :  { %839 = vmatprep.subr.mxu0 %v2584_v63  ;;  %910 = vmatprep.subr.mxu1 %v2586_v1 }
 0x16e   :  { %840 = vmatpush1.msra.mxu0 %v2590_v2  ;;  %911 = vmatpush1.msra.mxu1 %v2592_v3 }
 0x16f   :  { %841 = vmatprep.subr.mxu0 %v3585_v35  ;;  %912 = vmatprep.subr.mxu1 %v3586_v14 }
 0x170   :  { %842 = vmatpush1.msra.mxu0 %v3587_v44  ;;  %913 = vmatpush1.msra.mxu1 %v3588_v62 }
 0x171   :  { %843 = vmatprep.subr.mxu0 %v3589_v0  ;;  %914 = vmatprep.subr.mxu1 %v3590_v18  ;;  %v3611_v18 = vld [vmem:[#allocation36_spill] sm:$0xff] }
 0x172   :  { %844 = vmatpush1.msra.mxu0 %v3591_v15  ;;  %915 = vmatpush1.msra.mxu1 %v3592_v26  ;;  %v3610_v15 = vld [vmem:[#allocation38_spill] sm:$0xff] }
 0x173   :  { %845 = vmatprep.subr.mxu0 %v3593_v4  ;;  %916 = vmatprep.subr.mxu1 %v3594_v13 }
 0x174   :  { %846 = vmatpush1.msra.mxu0 %v3595_v8  ;;  %917 = vmatpush1.msra.mxu1 %v3596_v11  ;;  %v3606_v11 = vld [vmem:[#allocation13_spill] sm:$0xff] }
 0x175   :  { %847 = vmatprep.subr.mxu0 %v3597_v10  ;;  %918 = vmatprep.subr.mxu1 %v3598_v5  ;;  %v3607_v10 = vld [vmem:[#allocation14_spill] sm:$0xff] }
 0x176   :  { %848 = vmatpush1.msra.mxu0 %v3599_v9  ;;  %919 = vmatpush1.msra.mxu1 %v3600_v7  ;;  %v3608_v9 = vld [vmem:[#allocation35_spill] sm:$0xff] }
 0x177   :  { %849 = vmatprep.subr.mxu0 %v3601_v12  ;;  %920 = vmatprep.subr.mxu1 %v3602_v16  ;;  %v3609_v12 = vld [vmem:[#allocation37_spill] sm:$0xff] }
 0x178   :  { %850 = vmatpush1.msra.mxu0 %v3603_v19  ;;  %883 = vmatprep.mubr.f32.mxu0 %v3604_v6 }
 0x179   :  { %921 = vmatpush1.msra.mxu1 %v3605_v53  ;;  %954 = vmatprep.mubr.f32.mxu1 %v3604_v6 }
 0x17a   :  { %996 = vmatprep.subr.mxu0 %v3606_v11  ;;  %1067 = vmatprep.subr.mxu1 %v3607_v10 }
 0x219   :  { %v708_v5 = vpop.f32.mrf.mxu0  ;;  %v779_v16 = vpop.f32.mrf.mxu1 }
 0x21a   :  { %v784_v8 = vadd.f32 %v708_v5, %v3608_v9  ;;  %v786_v6 = vadd.f32 %v779_v16, %v3611_v18 }
 0x21b   :  { %v710_v7 = vpop.f32.mrf.mxu0  ;;  %v781_v26 = vpop.f32.mrf.mxu1 }
 0x21c   :  { %v2010_v13 = vmul.f32 -1.442695, %v784_v8  ;;  %v785_v4 = vadd.f32 %v710_v7, %v3609_v12  ;;  %v787_v53 = vadd.f32 %v781_v26, %v3610_v15 }
 0x21e   :  { %2110 = vpow2.f32 %v2010_v13  ;;  %v2011_v19 = vmul.f32 -1.442695, %v785_v4  ;;  %v2012_v0 = vmul.f32 -1.442695, %v787_v53 }
 0x220   :  { %2112 = vpow2.f32 %v2011_v19 }
 0x221   :  { %2114 = vtanh.f32 %v786_v6 }
 0x222   :  { %2116 = vpow2.f32 %v2012_v0 }
 0x22b   :  { %v2111_v11 = vpop.eup %2110 }
 0x22c   :  { %v791_v62 = vadd.f32 1.0, %v2111_v11 }
 0x22d   :  { %v2113_v10 = vpop.eup %2112 }
 0x22e   :  { %2118 = vrcp.f32 %v791_v62  ;;  %v797_v5 = vadd.f32 1.0, %v2113_v10  ;;  %v2115_v8 = vpop.eup %2114  ;;  %v3633_v62 = vld [vmem:[#allocation41_spill] sm:$0xff]  ;;  %v3634_v10 = vld [vmem:[#allocation42_spill] sm:$0xff] }
 0x22f   :  { %v2117_v9 = vpop.eup %2116 }
 0x230   :  { %2120 = vrcp.f32 %v797_v5  ;;  %v804_v12 = vadd.f32 1.0, %v2117_v9 }
 0x232   :  { %2122 = vrcp.f32 %v804_v12 }
 0x23b   :  { %v2119_v13 = vpop.eup %2118 }
 0x23c   :  { %v808_v7 = vmul.f32 %v2119_v13, %v2115_v8  ;;  %v3635_v8 = vld [vmem:[#allocation40_spill] sm:$0xff] }
 0x23d   :  { %v2121_v4 = vpop.eup %2120 }
 0x23e   :  { %v807_v19 = vmul.f32 %v2121_v4, %v2837_v17 }
 0x23f   :  { %v2123_v18 = vpop.eup %2122 }
 0x240   :  { %v2911_v15 = vadd.f32 %v808_v7, %v807_v19 }
 0x242   :  { %2124 = vtanh.f32 %v2911_v15 }
 0x24f   :  { %v2125_v26 = vpop.eup %2124 }
 0x250   :  { %v811_v16 = vmul.f32 %v2125_v26, %v2123_v18 }
 0x252   :  { %884 = vmatmul.mubr.f32.vlgmr.msra.gmra.mxu0 %v811_v16  ;;  %955 = vmatmul.mubr.f32.vlgmr.msra.gmra.mxu1 %v811_v16 }
 0x253   :  { %997 = vmatpush1.msra.mxu0 %v2435_v20  ;;  %1068 = vmatpush1.msra.mxu1 %v2437_v21  ;;  %v3612_v20 = vld [vmem:[#allocation18_spill] sm:$0xff]  ;;  %v3613_v21 = vld [vmem:[#allocation19_spill] sm:$0xff] }
 0x254   :  { %998 = vmatprep.subr.mxu0 %v2441_v22  ;;  %1069 = vmatprep.subr.mxu1 %v2443_v23  ;;  %v3614_v22 = vld [vmem:[#allocation20_spill] sm:$0xff]  ;;  %v3615_v23 = vld [vmem:[#allocation21_spill] sm:$0xff] }
 0x255   :  { %999 = vmatpush1.msra.mxu0 %v2449_v24  ;;  %1070 = vmatpush1.msra.mxu1 %v2451_v25  ;;  %v3616_v24 = vld [vmem:[#allocation22_spill] sm:$0xff]  ;;  %v3617_v25 = vld [vmem:[#allocation23_spill] sm:$0xff] }
 0x256   :  { %1000 = vmatprep.subr.mxu0 %v2460_v27  ;;  %1071 = vmatprep.subr.mxu1 %v2462_v28  ;;  %v3618_v27 = vld [vmem:[#allocation24_spill] sm:$0xff]  ;;  %v3619_v28 = vld [vmem:[#allocation25_spill] sm:$0xff] }
 0x257   :  { %1001 = vmatpush1.msra.mxu0 %v2466_v29  ;;  %1072 = vmatpush1.msra.mxu1 %v2468_v30  ;;  %v3620_v29 = vld [vmem:[#allocation26_spill] sm:$0xff]  ;;  %v3621_v30 = vld [vmem:[#allocation27_spill] sm:$0xff] }
 0x258   :  { %1002 = vmatprep.subr.mxu0 %v2472_v31  ;;  %1073 = vmatprep.subr.mxu1 %v2474_v32  ;;  %v3622_v31 = vld [vmem:[#allocation28_spill] sm:$0xff]  ;;  %v3623_v32 = vld [vmem:[#allocation29_spill] sm:$0xff] }
 0x259   :  { %1003 = vmatpush1.msra.mxu0 %v2480_v33  ;;  %1074 = vmatpush1.msra.mxu1 %v2482_v34  ;;  %v3624_v33 = vld [vmem:[#allocation30_spill] sm:$0xff]  ;;  %v3625_v34 = vld [vmem:[#allocation31_spill] sm:$0xff] }
 0x25a   :  { %1004 = vmatprep.subr.mxu0 %v2491_v36  ;;  %1075 = vmatprep.subr.mxu1 %v2493_v37  ;;  %v3626_v36 = vld [vmem:[#allocation32_spill] sm:$0xff]  ;;  %v3627_v37 = vld [vmem:[#allocation33_spill] sm:$0xff] }
 0x25b   :  { %1005 = vmatpush1.msra.mxu0 %v2497_v38  ;;  %1076 = vmatpush1.msra.mxu1 %v2499_v39  ;;  %v3628_v38 = vmov 0.0   ;;  %v3629_v39 = vld [vmem:[#allocation34_spill] sm:$0xff] }
 0x25c   :  { %1006 = vmatprep.subr.mxu0 %v2503_v40  ;;  %1077 = vmatprep.subr.mxu1 %v2505_v41  ;;  %v2978_v40 = vld [vmem:[#allocation6 + $0x1e8] sm:$0xff]  ;;  %v2981_v41 = vld [vmem:[#allocation6 + $0x1f8] sm:$0xff] }
 0x25d   :  { %1007 = vmatpush1.msra.mxu0 %v2511_v42  ;;  %1078 = vmatpush1.msra.mxu1 %v2513_v43  ;;  %3630 = vst [vmem:[#allocation15_spill] sm:$0xff] %v2978_v40  ;;  %3631 = vst [vmem:[#allocation16_spill] sm:$0xff] %v2981_v41  ;;  %v3632_v43 = vld [vmem:[#allocation39_spill] sm:$0xff] }
 0x25e   :  { %1008 = vmatprep.subr.mxu0 %v2522_v45  ;;  %1079 = vmatprep.subr.mxu1 %v2524_v46 }
 0x25f   :  { %1009 = vmatpush1.msra.mxu0 %v2528_v47  ;;  %1080 = vmatpush1.msra.mxu1 %v2530_v48 }
 0x260   :  { %1010 = vmatprep.subr.mxu0 %v2534_v49  ;;  %1081 = vmatprep.subr.mxu1 %v2536_v50 }
 0x261   :  { %1011 = vmatpush1.msra.mxu0 %v2542_v51  ;;  %1082 = vmatpush1.msra.mxu1 %v2544_v52 }
 0x262   :  { %1012 = vmatprep.subr.mxu0 %v2553_v54  ;;  %1083 = vmatprep.subr.mxu1 %v2555_v55 }
 0x263   :  { %1013 = vmatpush1.msra.mxu0 %v2559_v56  ;;  %1084 = vmatpush1.msra.mxu1 %v2561_v57 }
 0x264   :  { %1014 = vmatprep.subr.mxu0 %v2565_v58  ;;  %1085 = vmatprep.subr.mxu1 %v2567_v59 }
 0x265   :  { %1015 = vmatpush1.msra.mxu0 %v2573_v60  ;;  %1086 = vmatpush1.msra.mxu1 %v2575_v61 }
 0x266   :  { %1016 = vmatprep.subr.mxu0 %v2584_v63  ;;  %1087 = vmatprep.subr.mxu1 %v2586_v1 }
 0x267   :  { %1017 = vmatpush1.msra.mxu0 %v2590_v2  ;;  %1088 = vmatpush1.msra.mxu1 %v2592_v3 }
 0x268   :  { %1018 = vmatprep.subr.mxu0 %v3585_v35  ;;  %1089 = vmatprep.subr.mxu1 %v3586_v14 }
 0x269   :  { %1019 = vmatpush1.msra.mxu0 %v3587_v44  ;;  %1090 = vmatpush1.msra.mxu1 %v3612_v20 }
 0x26a   :  { %1020 = vmatprep.subr.mxu0 %v3613_v21  ;;  %1091 = vmatprep.subr.mxu1 %v3614_v22 }
 0x26b   :  { %1021 = vmatpush1.msra.mxu0 %v3615_v23  ;;  %1092 = vmatpush1.msra.mxu1 %v3616_v24 }
 0x26c   :  { %1022 = vmatprep.subr.mxu0 %v3617_v25  ;;  %1093 = vmatprep.subr.mxu1 %v3618_v27 }
 0x26d   :  { %1023 = vmatpush1.msra.mxu0 %v3619_v28  ;;  %1094 = vmatpush1.msra.mxu1 %v3620_v29 }
 0x26e   :  { %1024 = vmatprep.subr.mxu0 %v3621_v30  ;;  %1095 = vmatprep.subr.mxu1 %v3622_v31 }
 0x26f   :  { %1025 = vmatpush1.msra.mxu0 %v3623_v32  ;;  %1096 = vmatpush1.msra.mxu1 %v3624_v33 }
 0x270   :  { %1026 = vmatprep.subr.mxu0 %v3625_v34  ;;  %1097 = vmatprep.subr.mxu1 %v3626_v36 }
 0x271   :  { %1027 = vmatpush1.msra.mxu0 %v3627_v37  ;;  %1060 = vmatprep.mubr.f32.mxu0 %v3628_v38 }
 0x272   :  { %1098 = vmatpush1.msra.mxu1 %v3629_v39  ;;  %1131 = vmatprep.mubr.f32.mxu1 %v3628_v38 }
 0x273   :  { %1173 = vmatprep.subr.mxu0 %v2978_v40  ;;  %1244 = vmatprep.subr.mxu1 %v2981_v41 }
 0x312   :  { %v885_v42 = vpop.f32.mrf.mxu0  ;;  %v956_v6 = vpop.f32.mrf.mxu1 }
 0x313   :  { %v961_v45 = vadd.f32 %v885_v42, %v3632_v43  ;;  %v963_v9 = vadd.f32 %v956_v6, %v3635_v8  ;;  %v3007_v8 = vld [vmem:[#allocation6 + $0x1d0] sm:$0xff] }
 0x314   :  { %v887_v46 = vpop.f32.mrf.mxu0  ;;  %v958_v11 = vpop.f32.mrf.mxu1 }
 0x315   :  { %v2013_v17 = vmul.f32 -1.442695, %v961_v45  ;;  %v962_v0 = vadd.f32 %v887_v46, %v3633_v62  ;;  %v964_v5 = vadd.f32 %v958_v11, %v3634_v10  ;;  %v2995_v11 = vld [vmem:[#allocation6 + $0x1f0] sm:$0xff]  ;;  %v2998_v10 = vld [vmem:[#allocation6 + $0x1c8] sm:$0xff] }
 0x317   :  { %2126 = vpow2.f32 %v2013_v17  ;;  %v2014_v53 = vmul.f32 -1.442695, %v962_v0  ;;  %v2015_v13 = vmul.f32 -1.442695, %v964_v5  ;;  %v3004_v5 = vld [vmem:[#allocation6 + $0x1c0] sm:$0xff] }
 0x319   :  { %2128 = vpow2.f32 %v2014_v53  ;;  %v2992_v53 = vld [vmem:[#allocation6 + $0x1e0] sm:$0xff] }
 0x31a   :  { %2130 = vtanh.f32 %v963_v9  ;;  %v3010_v9 = vld [vmem:[#allocation6 + $0x1a8] sm:$0xff] }
 0x31b   :  { %2132 = vpow2.f32 %v2015_v13  ;;  %v3013_v13 = vld [vmem:[#allocation6 + $0x1b8] sm:$0xff] }
 0x324   :  { %v2127_v7 = vpop.eup %2126 }
 0x325   :  { %v968_v4 = vadd.f32 1.0, %v2127_v7  ;;  %v3016_v7 = vld [vmem:[#allocation6 + $0x1a0] sm:$0xff] }
 0x326   :  { %v2129_v12 = vpop.eup %2128 }
 0x327   :  { %2134 = vrcp.f32 %v968_v4  ;;  %v974_v19 = vadd.f32 1.0, %v2129_v12  ;;  %v2131_v18 = vpop.eup %2130  ;;  %v3019_v4 = vld [vmem:[#allocation6 + $0x1b0] sm:$0xff]  ;;  %v3022_v12 = vld [vmem:[#allocation6 + $0x188] sm:$0xff] }
 0x328   :  { %v2133_v26 = vpop.eup %2132 }
 0x329   :  { %2136 = vrcp.f32 %v974_v19  ;;  %v981_v45 = vadd.f32 1.0, %v2133_v26  ;;  %v3025_v19 = vld [vmem:[#allocation6 + $0x198] sm:$0xff]  ;;  %v3031_v26 = vld [vmem:[#allocation6 + $0x190] sm:$0xff] }
 0x32b   :  { %2138 = vrcp.f32 %v981_v45  ;;  %v3043_v45 = vld [vmem:[#allocation6 + $0x170] sm:$0xff] }
 0x32c   :  { %3637 = vst [vmem:[#allocation13_spill] sm:$0xff] %v3043_v45 }
 0x334   :  { %v2135_v16 = vpop.eup %2134 }
 0x335   :  { %v985_v42 = vmul.f32 %v2135_v16, %v2131_v18  ;;  %v3028_v18 = vld [vmem:[#allocation6 + $0x180] sm:$0xff]  ;;  %v3034_v16 = vld [vmem:[#allocation6 + $0x168] sm:$0xff] }
 0x336   :  { %v2137_v43 = vpop.eup %2136 }
 0x337   :  { %v984_v46 = vmul.f32 %v2137_v43, %v2911_v15  ;;  %v3001_v15 = vld [vmem:[#allocation6 + $0x1d8] sm:$0xff]  ;;  %v3040_v43 = vld [vmem:[#allocation6 + $0x160] sm:$0xff] }
 0x338   :  { %v2139_v62 = vpop.eup %2138  ;;  %3636 = vst [vmem:[#allocation17_spill] sm:$0xff] %v3040_v43 }
 0x339   :  { %v2989_v17 = vadd.f32 %v985_v42, %v984_v46  ;;  %v3037_v42 = vld [vmem:[#allocation6 + $0x178] sm:$0xff]  ;;  %v3046_v46 = vld [vmem:[#allocation6 + $0x148] sm:$0xff] }
 0x33b   :  { %2140 = vtanh.f32 %v2989_v17 }
 0x348   :  { %v2141_v0 = vpop.eup %2140 }
 0x349   :  { %v988_v6 = vmul.f32 %v2141_v0, %v2139_v62  ;;  %v3049_v62 = vld [vmem:[#allocation6 + $0x158] sm:$0xff]  ;;  %v3052_v0 = vld [vmem:[#allocation6 + $0x140] sm:$0xff] }
 0x34b   :  { %1061 = vmatmul.mubr.f32.vlgmr.msra.gmra.mxu0 %v988_v6  ;;  %1132 = vmatmul.mubr.f32.vlgmr.msra.gmra.mxu1 %v988_v6  ;;  %v3055_v6 = vld [vmem:[#allocation6 + $0x150] sm:$0xff] }
 0x34c   :  { %1174 = vmatpush1.msra.mxu0 %v2992_v53  ;;  %1245 = vmatpush1.msra.mxu1 %v2995_v11 }
 0x34d   :  { %1175 = vmatprep.subr.mxu0 %v2998_v10  ;;  %1246 = vmatprep.subr.mxu1 %v3001_v15 }
 0x34e   :  { %1176 = vmatpush1.msra.mxu0 %v3004_v5  ;;  %1247 = vmatpush1.msra.mxu1 %v3007_v8 }
 0x34f   :  { %1177 = vmatprep.subr.mxu0 %v3010_v9  ;;  %1248 = vmatprep.subr.mxu1 %v3013_v13 }
 0x350   :  { %1178 = vmatpush1.msra.mxu0 %v3016_v7  ;;  %1249 = vmatpush1.msra.mxu1 %v3019_v4 }
 0x351   :  { %1179 = vmatprep.subr.mxu0 %v3022_v12  ;;  %1250 = vmatprep.subr.mxu1 %v3025_v19 }
 0x352   :  { %1180 = vmatpush1.msra.mxu0 %v3028_v18  ;;  %1251 = vmatpush1.msra.mxu1 %v3031_v26 }
 0x353   :  { %1181 = vmatprep.subr.mxu0 %v3034_v16  ;;  %1252 = vmatprep.subr.mxu1 %v3037_v42 }
 0x354   :  { %1182 = vmatpush1.msra.mxu0 %v3040_v43  ;;  %1253 = vmatpush1.msra.mxu1 %v3043_v45  ;;  %v3058_v43 = vld [vmem:[#allocation6 + $0x128] sm:$0xff]  ;;  %v3061_v45 = vld [vmem:[#allocation6 + $0x138] sm:$0xff] }
 0x355   :  { %1183 = vmatprep.subr.mxu0 %v3046_v46  ;;  %1254 = vmatprep.subr.mxu1 %v3049_v62 }
 0x356   :  { %1184 = vmatpush1.msra.mxu0 %v3052_v0  ;;  %1255 = vmatpush1.msra.mxu1 %v3055_v6 }
 0x357   :  { %1185 = vmatprep.subr.mxu0 %v3058_v43  ;;  %1256 = vmatprep.subr.mxu1 %v3061_v45 }
 0x358   :  { %1186 = vmatpush1.msra.mxu0 %v2528_v47  ;;  %1257 = vmatpush1.msra.mxu1 %v2530_v48  ;;  %v3638_v48 = vld [vmem:[#allocation43_spill] sm:$0xff] }
 0x359   :  { %1187 = vmatprep.subr.mxu0 %v2534_v49  ;;  %1258 = vmatprep.subr.mxu1 %v2536_v50 }
 0x35a   :  { %1188 = vmatpush1.msra.mxu0 %v2542_v51  ;;  %1259 = vmatpush1.msra.mxu1 %v2544_v52  ;;  %v3639_v52 = vld [vmem:[#allocation45_spill] sm:$0xff] }
 0x35b   :  { %1189 = vmatprep.subr.mxu0 %v2553_v54  ;;  %1260 = vmatprep.subr.mxu1 %v2555_v55 }
 0x35c   :  { %1190 = vmatpush1.msra.mxu0 %v2559_v56  ;;  %1261 = vmatpush1.msra.mxu1 %v2561_v57 }
 0x35d   :  { %1191 = vmatprep.subr.mxu0 %v2565_v58  ;;  %1262 = vmatprep.subr.mxu1 %v2567_v59  ;;  %v3640_v58 = vld [vmem:[#allocation46_spill] sm:$0xff] }
 0x35e   :  { %1192 = vmatpush1.msra.mxu0 %v2573_v60  ;;  %1263 = vmatpush1.msra.mxu1 %v2575_v61  ;;  %v3641_v60 = vld [vmem:[#allocation44_spill] sm:$0xff] }
 0x35f   :  { %1193 = vmatprep.subr.mxu0 %v2584_v63  ;;  %1264 = vmatprep.subr.mxu1 %v2586_v1 }
 0x360   :  { %1194 = vmatpush1.msra.mxu0 %v2590_v2  ;;  %1265 = vmatpush1.msra.mxu1 %v2592_v3 }
 0x361   :  { %1195 = vmatprep.subr.mxu0 %v3585_v35  ;;  %1266 = vmatprep.subr.mxu1 %v3586_v14 }
 0x362   :  { %1196 = vmatpush1.msra.mxu0 %v3587_v44  ;;  %1267 = vmatpush1.msra.mxu1 %v3612_v20 }
 0x363   :  { %1197 = vmatprep.subr.mxu0 %v3613_v21  ;;  %1268 = vmatprep.subr.mxu1 %v3614_v22 }
 0x364   :  { %1198 = vmatpush1.msra.mxu0 %v3615_v23  ;;  %1269 = vmatpush1.msra.mxu1 %v3616_v24 }
 0x365   :  { %1199 = vmatprep.subr.mxu0 %v3617_v25  ;;  %1270 = vmatprep.subr.mxu1 %v3618_v27 }
 0x366   :  { %1200 = vmatpush1.msra.mxu0 %v3619_v28  ;;  %1271 = vmatpush1.msra.mxu1 %v3620_v29 }
 0x367   :  { %1201 = vmatprep.subr.mxu0 %v3621_v30  ;;  %1272 = vmatprep.subr.mxu1 %v3622_v31  ;;  %v3642_v30 = vld [vmem:[#allocation17_spill] sm:$0xff] }
 0x368   :  { %1202 = vmatpush1.msra.mxu0 %v3623_v32  ;;  %1273 = vmatpush1.msra.mxu1 %v3624_v33  ;;  %v3643_v31 = vld [vmem:[#allocation13_spill] sm:$0xff]  ;;  %v3138_v32 = vld [vmem:[#allocation6 + $0x120] sm:$0xff]  ;;  %v3141_v33 = vld [vmem:[#allocation6 + $0x130] sm:$0xff] }
 0x369   :  { %1203 = vmatprep.subr.mxu0 %v3625_v34  ;;  %1274 = vmatprep.subr.mxu1 %v3626_v36  ;;  %v3144_v34 = vld [vmem:[#allocation6 + $0x108] sm:$0xff]  ;;  %v3147_v36 = vld [vmem:[#allocation6 + $0x118] sm:$0xff] }
 0x36a   :  { %1204 = vmatpush1.msra.mxu0 %v3627_v37  ;;  %1237 = vmatprep.mubr.f32.mxu0 %v3628_v38  ;;  %v3150_v37 = vld [vmem:[#allocation6 + $0x100] sm:$0xff] }
 0x36b   :  { %1275 = vmatpush1.msra.mxu1 %v3629_v39  ;;  %1308 = vmatprep.mubr.f32.mxu1 %v3628_v38  ;;  %v3153_v39 = vld [vmem:[#allocation6 + $0x110] sm:$0xff] }
 0x36c   :  { %1350 = vmatprep.subr.mxu0 %v2978_v40  ;;  %1421 = vmatprep.subr.mxu1 %v2981_v41 }
 0x40b   :  { %v1062_v47 = vpop.f32.mrf.mxu0  ;;  %v1133_v55 = vpop.f32.mrf.mxu1 }
 0x40c   :  { %v1138_v49 = vadd.f32 %v1062_v47, %v3638_v48  ;;  %v1140_v61 = vadd.f32 %v1133_v55, %v3641_v60  ;;  %v3159_v47 = vld [vmem:[#allocation6 + $0xf8] sm:$0xff]  ;;  %v3162_v48 = vld [vmem:[#allocation6 + $0xe0] sm:$0xff]  ;;  %v3180_v55 = vld [vmem:[#allocation6 + $0xa8] sm:$0xff] }
 0x40d   :  { %v1064_v50 = vpop.f32.mrf.mxu0  ;;  %v1135_v57 = vpop.f32.mrf.mxu1  ;;  %v3195_v60 = vld [vmem:[#allocation6 + $0x98] sm:$0xff] }
 0x40e   :  { %v2016_v51 = vmul.f32 -1.442695, %v1138_v49  ;;  %v1139_v54 = vadd.f32 %v1064_v50, %v3639_v52  ;;  %v1141_v59 = vadd.f32 %v1135_v57, %v3640_v58  ;;  %v3165_v49 = vld [vmem:[#allocation6 + $0xf0] sm:$0xff]  ;;  %v3168_v50 = vld [vmem:[#allocation6 + $0xc8] sm:$0xff]  ;;  %v3174_v52 = vld [vmem:[#allocation6 + $0xc0] sm:$0xff] }
 0x40f   :  { %v3186_v57 = vld [vmem:[#allocation6 + $0xa0] sm:$0xff]  ;;  %v3189_v58 = vld [vmem:[#allocation6 + $0xb0] sm:$0xff] }
 0x410   :  { %2142 = vpow2.f32 %v2016_v51  ;;  %v2017_v56 = vmul.f32 -1.442695, %v1139_v54  ;;  %v2018_v63 = vmul.f32 -1.442695, %v1141_v59  ;;  %v3171_v51 = vld [vmem:[#allocation6 + $0xd8] sm:$0xff]  ;;  %v3177_v54 = vld [vmem:[#allocation6 + $0xd0] sm:$0xff] }
 0x411   :  { %v3192_v59 = vld [vmem:[#allocation6 + $0x88] sm:$0xff] }
 0x412   :  { %2144 = vpow2.f32 %v2017_v56  ;;  %v3183_v56 = vld [vmem:[#allocation6 + $0xb8] sm:$0xff] }
 0x413   :  { %2146 = vtanh.f32 %v1140_v61  ;;  %v3198_v61 = vld [vmem:[#allocation6 + $0x80] sm:$0xff] }
 0x414   :  { %2148 = vpow2.f32 %v2018_v63  ;;  %v3201_v63 = vld [vmem:[#allocation6 + $0x90] sm:$0xff] }
 0x415   :  { %3644 = vst [vmem:[#allocation14_spill] sm:$0xff] %v3201_v63 }
 0x41d   :  { %v2143_v1 = vpop.eup %2142 }
 0x41e   :  { %v1145_v2 = vadd.f32 1.0, %v2143_v1  ;;  %v3204_v1 = vld [vmem:[#allocation6 + $0x68] sm:$0xff] }
 0x41f   :  { %v2145_v3 = vpop.eup %2144  ;;  %3645 = vst [vmem:[#allocation35_spill] sm:$0xff] %v3204_v1 }
 0x420   :  { %2150 = vrcp.f32 %v1145_v2  ;;  %v1151_v35 = vadd.f32 1.0, %v2145_v3  ;;  %v2147_v14 = vpop.eup %2146  ;;  %v3207_v2 = vld [vmem:[#allocation6 + $0x78] sm:$0xff]  ;;  %v3210_v3 = vld [vmem:[#allocation6 + $0x60] sm:$0xff] }
 0x421   :  { %v2149_v44 = vpop.eup %2148  ;;  %3646 = vst [vmem:[#allocation37_spill] sm:$0xff] %v3207_v2  ;;  %3647 = vst [vmem:[#allocation38_spill] sm:$0xff] %v3210_v3 }
 0x422   :  { %2152 = vrcp.f32 %v1151_v35  ;;  %v1158_v23 = vadd.f32 1.0, %v2149_v44  ;;  %v3213_v35 = vld [vmem:[#allocation6 + $0x70] sm:$0xff]  ;;  %v3219_v44 = vld [vmem:[#allocation6 + $0x58] sm:$0xff] }
 0x423   :  { %3648 = vst [vmem:[#allocation36_spill] sm:$0xff] %v3213_v35  ;;  %3650 = vst [vmem:[#allocation19_spill] sm:$0xff] %v3219_v44 }
 0x424   :  { %2154 = vrcp.f32 %v1158_v23  ;;  %v3231_v23 = vld [vmem:[#allocation6 + $0x38] sm:$0xff] }
 0x425   :  { %3654 = vst [vmem:[#allocation23_spill] sm:$0xff] %v3231_v23 }
 0x42d   :  { %v2151_v20 = vpop.eup %2150 }
 0x42e   :  { %v1162_v21 = vmul.f32 %v2151_v20, %v2147_v14  ;;  %v3216_v14 = vld [vmem:[#allocation6 + $0x48] sm:$0xff]  ;;  %v3222_v20 = vld [vmem:[#allocation6 + $0x40] sm:$0xff] }
 0x42f   :  { %v2153_v22 = vpop.eup %2152  ;;  %3649 = vst [vmem:[#allocation18_spill] sm:$0xff] %v3216_v14  ;;  %3651 = vst [vmem:[#allocation20_spill] sm:$0xff] %v3222_v20 }
 0x430   :  { %v1161_v24 = vmul.f32 %v2153_v22, %v2989_v17  ;;  %v3156_v17 = vld [vmem:[#allocation6 + $0xe8] sm:$0xff] }
 0x431   :  { %v2155_v27 = vpop.eup %2154  ;;  %v3228_v22 = vld [vmem:[#allocation6 + $0x28] sm:$0xff] }
 0x432   :  { %v3111_v25 = vadd.f32 %v1162_v21, %v1161_v24  ;;  %v3225_v21 = vld [vmem:[#allocation6 + $0x50] sm:$0xff]  ;;  %3653 = vst [vmem:[#allocation22_spill] sm:$0xff] %v3228_v22  ;;  %v3234_v24 = vld [vmem:[#allocation6 + $0x20] sm:$0xff] }
 0x433   :  { %3652 = vst [vmem:[#allocation21_spill] sm:$0xff] %v3225_v21  ;;  %3655 = vst [vmem:[#allocation24_spill] sm:$0xff] %v3234_v24 }
 0x434   :  { %2156 = vtanh.f32 %v3111_v25 }
 0x441   :  { %v2157_v28 = vpop.eup %2156 }
 0x442   :  { %v1165_v29 = vmul.f32 %v2157_v28, %v2155_v27  ;;  %v3237_v27 = vld [vmem:[#allocation6 + $0x30] sm:$0xff]  ;;  %v3240_v28 = vld [vmem:[#allocation6 + $0x8] sm:$0xff] }
 0x443   :  { %3656 = vst [vmem:[#allocation25_spill] sm:$0xff] %v3237_v27  ;;  %3657 = vst [vmem:[#allocation26_spill] sm:$0xff] %v3240_v28 }
 0x444   :  { %1238 = vmatmul.mubr.f32.vlgmr.msra.gmra.mxu0 %v1165_v29  ;;  %1309 = vmatmul.mubr.f32.vlgmr.msra.gmra.mxu1 %v1165_v29  ;;  %v3243_v29 = vld [vmem:[#allocation6 + $0x18] sm:$0xff] }
 0x445   :  { %1351 = vmatpush1.msra.mxu0 %v2992_v53  ;;  %1422 = vmatpush1.msra.mxu1 %v2995_v11  ;;  %3658 = vst [vmem:[#allocation27_spill] sm:$0xff] %v3243_v29 }
 0x446   :  { %1352 = vmatprep.subr.mxu0 %v2998_v10  ;;  %1423 = vmatprep.subr.mxu1 %v3001_v15 }
 0x447   :  { %1353 = vmatpush1.msra.mxu0 %v3004_v5  ;;  %1424 = vmatpush1.msra.mxu1 %v3007_v8 }
 0x448   :  { %1354 = vmatprep.subr.mxu0 %v3010_v9  ;;  %1425 = vmatprep.subr.mxu1 %v3013_v13 }
 0x449   :  { %1355 = vmatpush1.msra.mxu0 %v3016_v7  ;;  %1426 = vmatpush1.msra.mxu1 %v3019_v4 }
 0x44a   :  { %1356 = vmatprep.subr.mxu0 %v3022_v12  ;;  %1427 = vmatprep.subr.mxu1 %v3025_v19 }
 0x44b   :  { %1357 = vmatpush1.msra.mxu0 %v3028_v18  ;;  %1428 = vmatpush1.msra.mxu1 %v3031_v26 }
 0x44c   :  { %1358 = vmatprep.subr.mxu0 %v3034_v16  ;;  %1429 = vmatprep.subr.mxu1 %v3037_v42 }
 0x44d   :  { %1359 = vmatpush1.msra.mxu0 %v3642_v30  ;;  %1430 = vmatpush1.msra.mxu1 %v3643_v31 }
 0x44e   :  { %1360 = vmatprep.subr.mxu0 %v3046_v46  ;;  %1431 = vmatprep.subr.mxu1 %v3049_v62 }
 0x44f   :  { %1361 = vmatpush1.msra.mxu0 %v3052_v0  ;;  %1432 = vmatpush1.msra.mxu1 %v3055_v6 }
 0x450   :  { %1362 = vmatprep.subr.mxu0 %v3058_v43  ;;  %1433 = vmatprep.subr.mxu1 %v3061_v45 }
 0x451   :  { %1363 = vmatpush1.msra.mxu0 %v3138_v32  ;;  %1434 = vmatpush1.msra.mxu1 %v3141_v33 }
 0x452   :  { %1364 = vmatprep.subr.mxu0 %v3144_v34  ;;  %1435 = vmatprep.subr.mxu1 %v3147_v36 }
 0x453   :  { %1365 = vmatpush1.msra.mxu0 %v3150_v37  ;;  %1436 = vmatpush1.msra.mxu1 %v3153_v39 }
 0x454   :  { %1366 = vmatprep.subr.mxu0 %v3156_v17  ;;  %1437 = vmatprep.subr.mxu1 %v3159_v47 }
 0x455   :  { %1367 = vmatpush1.msra.mxu0 %v3162_v48  ;;  %1438 = vmatpush1.msra.mxu1 %v3165_v49 }
 0x456   :  { %1368 = vmatprep.subr.mxu0 %v3168_v50  ;;  %1439 = vmatprep.subr.mxu1 %v3171_v51 }
 0x457   :  { %1369 = vmatpush1.msra.mxu0 %v3174_v52  ;;  %1440 = vmatpush1.msra.mxu1 %v3177_v54 }
 0x458   :  { %1370 = vmatprep.subr.mxu0 %v3180_v55  ;;  %1441 = vmatprep.subr.mxu1 %v3183_v56 }
 0x459   :  { %1371 = vmatpush1.msra.mxu0 %v3186_v57  ;;  %1442 = vmatpush1.msra.mxu1 %v3189_v58 }
 0x45a   :  { %1372 = vmatprep.subr.mxu0 %v3192_v59  ;;  %1443 = vmatprep.subr.mxu1 %v3195_v60 }
 0x45b   :  { %1373 = vmatpush1.msra.mxu0 %v3198_v61  ;;  %1444 = vmatpush1.msra.mxu1 %v3201_v63 }
 0x45c   :  { %1374 = vmatprep.subr.mxu0 %v3204_v1  ;;  %1445 = vmatprep.subr.mxu1 %v3207_v2  ;;  %v3664_v2 = vld [vmem:[#allocation48_spill] sm:$0xff] }
 0x45d   :  { %1375 = vmatpush1.msra.mxu0 %v3210_v3  ;;  %1446 = vmatpush1.msra.mxu1 %v3213_v35  ;;  %v3663_v3 = vld [vmem:[#allocation50_spill] sm:$0xff] }
 0x45e   :  { %1376 = vmatprep.subr.mxu0 %v3216_v14  ;;  %1447 = vmatprep.subr.mxu1 %v3219_v44 }
 0x45f   :  { %1377 = vmatpush1.msra.mxu0 %v3222_v20  ;;  %1448 = vmatpush1.msra.mxu1 %v3225_v21  ;;  %v3662_v20 = vld [vmem:[#allocation49_spill] sm:$0xff] }
 0x460   :  { %1378 = vmatprep.subr.mxu0 %v3228_v22  ;;  %1449 = vmatprep.subr.mxu1 %v3231_v23  ;;  %v3246_v22 = vld [vmem:[#allocation6] sm:$0xff]  ;;  %v3250_v23 = vld [vmem:[#allocation6 + $0x10] sm:$0xff] }
 0x461   :  { %1379 = vmatpush1.msra.mxu0 %v3234_v24  ;;  %1450 = vmatpush1.msra.mxu1 %v3237_v27  ;;  %3659 = vst [vmem:[#allocation28_spill] sm:$0xff] %v3246_v22  ;;  %3660 = vst [vmem:[#allocation29_spill] sm:$0xff] %v3250_v23  ;;  %v3661_v27 = vld [vmem:[#allocation47_spill] sm:$0xff] }
 0x462   :  { %1380 = vmatprep.subr.mxu0 %v3240_v28  ;;  %1451 = vmatprep.subr.mxu1 %v3243_v29 }
 0x463   :  { %1381 = vmatpush1.msra.mxu0 %v3246_v22  ;;  %1414 = vmatprep.mubr.f32.mxu0 %v3628_v38 }
 0x464   :  { %1452 = vmatpush1.msra.mxu1 %v3250_v23  ;;  %1485 = vmatprep.mubr.f32.mxu1 %v3628_v38 }
 0x465   :  { %1527 = vmatprep.subr.mxu0 %v2978_v40  ;;  %1598 = vmatprep.subr.mxu1 %v2981_v41 }
 0x504   :  { %v1239_v28 = vpop.f32.mrf.mxu0  ;;  %v1310_v22 = vpop.f32.mrf.mxu1 }
 0x505   :  { %v1315_v24 = vadd.f32 %v1239_v28, %v3661_v27  ;;  %v1317_v38 = vadd.f32 %v1310_v22, %v3664_v2  ;;  %v3670_v22 = vld [vmem:[#allocation18_spill] sm:$0xff] }
 0x506   :  { %v1241_v29 = vpop.f32.mrf.mxu0  ;;  %v1312_v35 = vpop.f32.mrf.mxu1 }
 0x507   :  { %v2019_v21 = vmul.f32 -1.442695, %v1315_v24  ;;  %v1316_v44 = vadd.f32 %v1241_v29, %v3662_v20  ;;  %v1318_v23 = vadd.f32 %v1312_v35, %v3663_v3  ;;  %v3669_v35 = vld [vmem:[#allocation36_spill] sm:$0xff] }
 0x509   :  { %2158 = vpow2.f32 %v2019_v21  ;;  %v2020_v14 = vmul.f32 -1.442695, %v1316_v44  ;;  %v2021_v1 = vmul.f32 -1.442695, %v1318_v23  ;;  %v3671_v23 = vld [vmem:[#allocation19_spill] sm:$0xff] }
 0x50b   :  { %2160 = vpow2.f32 %v2020_v14 }
 0x50c   :  { %2162 = vtanh.f32 %v1317_v38 }
 0x50d   :  { %2164 = vpow2.f32 %v2021_v1  ;;  %v3668_v1 = vld [vmem:[#allocation38_spill] sm:$0xff] }
 0x516   :  { %v2159_v40 = vpop.eup %2158 }
 0x517   :  { %v1322_v63 = vadd.f32 1.0, %v2159_v40 }
 0x518   :  { %v2161_v41 = vpop.eup %2160 }
 0x519   :  { %2166 = vrcp.f32 %v1322_v63  ;;  %v1328_v27 = vadd.f32 1.0, %v2161_v41  ;;  %v2163_v24 = vpop.eup %2162  ;;  %v3665_v41 = vld [vmem:[#allocation14_spill] sm:$0xff]  ;;  %v3667_v63 = vld [vmem:[#allocation37_spill] sm:$0xff] }
 0x51a   :  { %v2165_v20 = vpop.eup %2164 }
 0x51b   :  { %2168 = vrcp.f32 %v1328_v27  ;;  %v1335_v14 = vadd.f32 1.0, %v2165_v20  ;;  %v3672_v27 = vld [vmem:[#allocation20_spill] sm:$0xff]  ;;  %v3674_v20 = vld [vmem:[#allocation22_spill] sm:$0xff] }
 0x51d   :  { %2170 = vrcp.f32 %v1335_v14  ;;  %v3678_v14 = vld [vmem:[#allocation26_spill] sm:$0xff] }
 0x526   :  { %v2167_v21 = vpop.eup %2166 }
 0x527   :  { %v1339_v28 = vmul.f32 %v2167_v21, %v2163_v24  ;;  %v3673_v24 = vld [vmem:[#allocation21_spill] sm:$0xff]  ;;  %v3675_v21 = vld [vmem:[#allocation23_spill] sm:$0xff] }
 0x528   :  { %v2169_v44 = vpop.eup %2168 }
 0x529   :  { %v1338_v29 = vmul.f32 %v2169_v44, %v3111_v25  ;;  %v3666_v25 = vld [vmem:[#allocation35_spill] sm:$0xff]  ;;  %v3677_v44 = vld [vmem:[#allocation25_spill] sm:$0xff] }
 0x52a   :  { %v2171_v40 = vpop.eup %2170 }
 0x52b   :  { %v3261_v3 = vadd.f32 %v1339_v28, %v1338_v29  ;;  %v3676_v28 = vld [vmem:[#allocation24_spill] sm:$0xff]  ;;  %v3679_v29 = vld [vmem:[#allocation27_spill] sm:$0xff] }
 0x52d   :  { %2172 = vtanh.f32 %v3261_v3 }
 0x53a   :  { %v2173_v38 = vpop.eup %2172 }
 0x53b   :  { %v1342_v2 = vmul.f32 %v2173_v38, %v2171_v40  ;;  %v3680_v40 = vld [vmem:[#allocation28_spill] sm:$0xff]  ;;  %v3681_v38 = vmov 0.0  }
 0x53d   :  { %1415 = vmatmul.mubr.f32.vlgmr.msra.gmra.mxu0 %v1342_v2  ;;  %1486 = vmatmul.mubr.f32.vlgmr.msra.gmra.mxu1 %v1342_v2  ;;  %v3682_v2 = vld [vmem:[#allocation29_spill] sm:$0xff] }
 0x53e   :  { %1528 = vmatpush1.msra.mxu0 %v2992_v53  ;;  %1599 = vmatpush1.msra.mxu1 %v2995_v11 }
 0x53f   :  { %1529 = vmatprep.subr.mxu0 %v2998_v10  ;;  %1600 = vmatprep.subr.mxu1 %v3001_v15 }
 0x540   :  { %1530 = vmatpush1.msra.mxu0 %v3004_v5  ;;  %1601 = vmatpush1.msra.mxu1 %v3007_v8 }
 0x541   :  { %1531 = vmatprep.subr.mxu0 %v3010_v9  ;;  %1602 = vmatprep.subr.mxu1 %v3013_v13 }
 0x542   :  { %1532 = vmatpush1.msra.mxu0 %v3016_v7  ;;  %1603 = vmatpush1.msra.mxu1 %v3019_v4 }
 0x543   :  { %1533 = vmatprep.subr.mxu0 %v3022_v12  ;;  %1604 = vmatprep.subr.mxu1 %v3025_v19 }
 0x544   :  { %1534 = vmatpush1.msra.mxu0 %v3028_v18  ;;  %1605 = vmatpush1.msra.mxu1 %v3031_v26 }
 0x545   :  { %1535 = vmatprep.subr.mxu0 %v3034_v16  ;;  %1606 = vmatprep.subr.mxu1 %v3037_v42 }
 0x546   :  { %1536 = vmatpush1.msra.mxu0 %v3642_v30  ;;  %1607 = vmatpush1.msra.mxu1 %v3643_v31 }
 0x547   :  { %1537 = vmatprep.subr.mxu0 %v3046_v46  ;;  %1608 = vmatprep.subr.mxu1 %v3049_v62 }
 0x548   :  { %1538 = vmatpush1.msra.mxu0 %v3052_v0  ;;  %1609 = vmatpush1.msra.mxu1 %v3055_v6 }
 0x549   :  { %1539 = vmatprep.subr.mxu0 %v3058_v43  ;;  %1610 = vmatprep.subr.mxu1 %v3061_v45 }
 0x54a   :  { %1540 = vmatpush1.msra.mxu0 %v3138_v32  ;;  %1611 = vmatpush1.msra.mxu1 %v3141_v33 }
 0x54b   :  { %1541 = vmatprep.subr.mxu0 %v3144_v34  ;;  %1612 = vmatprep.subr.mxu1 %v3147_v36 }
 0x54c   :  { %1542 = vmatpush1.msra.mxu0 %v3150_v37  ;;  %1613 = vmatpush1.msra.mxu1 %v3153_v39 }
 0x54d   :  { %1543 = vmatprep.subr.mxu0 %v3156_v17  ;;  %1614 = vmatprep.subr.mxu1 %v3159_v47 }
 0x54e   :  { %1544 = vmatpush1.msra.mxu0 %v3162_v48  ;;  %1615 = vmatpush1.msra.mxu1 %v3165_v49 }
 0x54f   :  { %1545 = vmatprep.subr.mxu0 %v3168_v50  ;;  %1616 = vmatprep.subr.mxu1 %v3171_v51 }
 0x550   :  { %1546 = vmatpush1.msra.mxu0 %v3174_v52  ;;  %1617 = vmatpush1.msra.mxu1 %v3177_v54 }
 0x551   :  { %1547 = vmatprep.subr.mxu0 %v3180_v55  ;;  %1618 = vmatprep.subr.mxu1 %v3183_v56 }
 0x552   :  { %1548 = vmatpush1.msra.mxu0 %v3186_v57  ;;  %1619 = vmatpush1.msra.mxu1 %v3189_v58 }
 0x553   :  { %1549 = vmatprep.subr.mxu0 %v3192_v59  ;;  %1620 = vmatprep.subr.mxu1 %v3195_v60 }
 0x554   :  { %1550 = vmatpush1.msra.mxu0 %v3198_v61  ;;  %1621 = vmatpush1.msra.mxu1 %v3665_v41 }
 0x555   :  { %1551 = vmatprep.subr.mxu0 %v3666_v25  ;;  %1622 = vmatprep.subr.mxu1 %v3667_v63  ;;  %v3688_v63 = vld [vmem:[#allocation52_spill] sm:$0xff] }
 0x556   :  { %1552 = vmatpush1.msra.mxu0 %v3668_v1  ;;  %1623 = vmatpush1.msra.mxu1 %v3669_v35  ;;  %v3687_v1 = vld [vmem:[#allocation54_spill] sm:$0xff] }
 0x557   :  { %1553 = vmatprep.subr.mxu0 %v3670_v22  ;;  %1624 = vmatprep.subr.mxu1 %v3671_v23 }
 0x558   :  { %1554 = vmatpush1.msra.mxu0 %v3672_v27  ;;  %1625 = vmatpush1.msra.mxu1 %v3673_v24  ;;  %v3683_v24 = vld [vmem:[#allocation15_spill] sm:$0xff] }
 0x559   :  { %1555 = vmatprep.subr.mxu0 %v3674_v20  ;;  %1626 = vmatprep.subr.mxu1 %v3675_v21  ;;  %v3684_v20 = vld [vmem:[#allocation16_spill] sm:$0xff] }
 0x55a   :  { %1556 = vmatpush1.msra.mxu0 %v3676_v28  ;;  %1627 = vmatpush1.msra.mxu1 %v3677_v44  ;;  %v3685_v28 = vld [vmem:[#allocation51_spill] sm:$0xff] }
 0x55b   :  { %1557 = vmatprep.subr.mxu0 %v3678_v14  ;;  %1628 = vmatprep.subr.mxu1 %v3679_v29  ;;  %v3686_v14 = vld [vmem:[#allocation53_spill] sm:$0xff] }
 0x55c   :  { %1558 = vmatpush1.msra.mxu0 %v3680_v40  ;;  %1591 = vmatprep.mubr.f32.mxu0 %v3681_v38 }
 0x55d   :  { %1629 = vmatpush1.msra.mxu1 %v3682_v2  ;;  %1662 = vmatprep.mubr.f32.mxu1 %v3681_v38 }
 0x55e   :  { %1704 = vmatprep.subr.mxu0 %v3683_v24  ;;  %1775 = vmatprep.subr.mxu1 %v3684_v20 }
 0x5fd   :  { %v1416_v21 = vpop.f32.mrf.mxu0  ;;  %v1487_v29 = vpop.f32.mrf.mxu1 }
 0x5fe   :  { %v1492_v27 = vadd.f32 %v1416_v21, %v3685_v28  ;;  %v1494_v38 = vadd.f32 %v1487_v29, %v3688_v63 }
 0x5ff   :  { %v1418_v44 = vpop.f32.mrf.mxu0  ;;  %v1489_v35 = vpop.f32.mrf.mxu1 }
 0x600   :  { %v2022_v23 = vmul.f32 -1.442695, %v1492_v27  ;;  %v1493_v22 = vadd.f32 %v1418_v44, %v3686_v14  ;;  %v1495_v2 = vadd.f32 %v1489_v35, %v3687_v1 }
 0x602   :  { %2174 = vpow2.f32 %v2022_v23  ;;  %v2023_v40 = vmul.f32 -1.442695, %v1493_v22  ;;  %v2024_v25 = vmul.f32 -1.442695, %v1495_v2  ;;  %v1888_v2 = vld [vmem:[#allocation8 + $0x70] sm:$0xff] }
 0x604   :  { %2176 = vpow2.f32 %v2023_v40 }
 0x605   :  { %2178 = vtanh.f32 %v1494_v38  ;;  %v1889_v38 = vld [vmem:[#allocation8 + $0x78] sm:$0xff] }
 0x606   :  { %2180 = vpow2.f32 %v2024_v25 }
 0x60f   :  { %v2175_v24 = vpop.eup %2174 }
 0x610   :  { %v1499_v41 = vadd.f32 1.0, %v2175_v24  ;;  %v1887_v24 = vld [vmem:[#allocation8 + $0x68] sm:$0xff] }
 0x611   :  { %v2177_v20 = vpop.eup %2176 }
 0x612   :  { %2182 = vrcp.f32 %v1499_v41  ;;  %v1505_v21 = vadd.f32 1.0, %v2177_v20  ;;  %v2179_v27 = vpop.eup %2178  ;;  %v1886_v20 = vld [vmem:[#allocation8 + $0x60] sm:$0xff] }
 0x613   :  { %v2181_v28 = vpop.eup %2180 }
 0x614   :  { %2184 = vrcp.f32 %v1505_v21  ;;  %v1512_v14 = vadd.f32 1.0, %v2181_v28  ;;  %v1885_v21 = vld [vmem:[#allocation8 + $0x58] sm:$0xff]  ;;  %v1883_v28 = vld [vmem:[#allocation8 + $0x48] sm:$0xff] }
 0x616   :  { %2186 = vrcp.f32 %v1512_v14  ;;  %v1879_v14 = vld [vmem:[#allocation8 + $0x28] sm:$0xff] }
 0x61f   :  { %v2183_v23 = vpop.eup %2182 }
 0x620   :  { %v1516_v44 = vmul.f32 %v2183_v23, %v2179_v27  ;;  %v1884_v27 = vld [vmem:[#allocation8 + $0x50] sm:$0xff]  ;;  %v1882_v23 = vld [vmem:[#allocation8 + $0x40] sm:$0xff] }
 0x621   :  { %v2185_v22 = vpop.eup %2184 }
 0x622   :  { %v1515_v40 = vmul.f32 %v2185_v22, %v3261_v3  ;;  %v1880_v22 = vld [vmem:[#allocation8 + $0x30] sm:$0xff] }
 0x623   :  { %v2187_v63 = vpop.eup %2186 }
 0x624   :  { %v3335_v1 = vadd.f32 %v1516_v44, %v1515_v40  ;;  %v1881_v44 = vld [vmem:[#allocation8 + $0x38] sm:$0xff]  ;;  %v1878_v40 = vld [vmem:[#allocation8 + $0x20] sm:$0xff] }
 0x626   :  { %2188 = vtanh.f32 %v3335_v1 }
 0x633   :  { %v2189_v35 = vpop.eup %2188 }
 0x634   :  { %v1519_v29 = vmul.f32 %v2189_v35, %v2187_v63  ;;  %v1876_v63 = vld [vmem:[#allocation8 + $0x10] sm:$0xff]  ;;  %v1875_v35 = vld [vmem:[#allocation8 + $0x8] sm:$0xff] }
 0x636   :  { %1592 = vmatmul.mubr.f32.vlgmr.msra.gmra.mxu0 %v1519_v29  ;;  %1663 = vmatmul.mubr.f32.vlgmr.msra.gmra.mxu1 %v1519_v29  ;;  %v1874_v29 = vld [vmem:[#allocation8] sm:$0xff] }
 0x637   :  { %1705 = vmatpush1.msra.mxu0 %v2992_v53  ;;  %1776 = vmatpush1.msra.mxu1 %v2995_v11  ;;  %v3689_v53 = vld [vmem:[#allocation14_spill] sm:$0xff]  ;;  %v3690_v11 = vld [vmem:[#allocation35_spill] sm:$0xff] }
 0x638   :  { %1706 = vmatprep.subr.mxu0 %v2998_v10  ;;  %1777 = vmatprep.subr.mxu1 %v3001_v15  ;;  %v3691_v10 = vld [vmem:[#allocation37_spill] sm:$0xff]  ;;  %v3692_v15 = vld [vmem:[#allocation38_spill] sm:$0xff] }
 0x639   :  { %1707 = vmatpush1.msra.mxu0 %v3004_v5  ;;  %1778 = vmatpush1.msra.mxu1 %v3007_v8  ;;  %v3693_v5 = vld [vmem:[#allocation36_spill] sm:$0xff]  ;;  %v3694_v8 = vld [vmem:[#allocation18_spill] sm:$0xff] }
 0x63a   :  { %1708 = vmatprep.subr.mxu0 %v3010_v9  ;;  %1779 = vmatprep.subr.mxu1 %v3013_v13  ;;  %v3695_v9 = vld [vmem:[#allocation19_spill] sm:$0xff]  ;;  %v3696_v13 = vld [vmem:[#allocation20_spill] sm:$0xff] }
 0x63b   :  { %1709 = vmatpush1.msra.mxu0 %v3016_v7  ;;  %1780 = vmatpush1.msra.mxu1 %v3019_v4  ;;  %v3697_v7 = vld [vmem:[#allocation21_spill] sm:$0xff]  ;;  %v3698_v4 = vld [vmem:[#allocation22_spill] sm:$0xff] }
 0x63c   :  { %1710 = vmatprep.subr.mxu0 %v3022_v12  ;;  %1781 = vmatprep.subr.mxu1 %v3025_v19  ;;  %v3699_v12 = vld [vmem:[#allocation23_spill] sm:$0xff]  ;;  %v3700_v19 = vld [vmem:[#allocation24_spill] sm:$0xff] }
 0x63d   :  { %1711 = vmatpush1.msra.mxu0 %v3028_v18  ;;  %1782 = vmatpush1.msra.mxu1 %v3031_v26  ;;  %v3701_v18 = vld [vmem:[#allocation25_spill] sm:$0xff]  ;;  %v3702_v26 = vld [vmem:[#allocation26_spill] sm:$0xff] }
 0x63e   :  { %1712 = vmatprep.subr.mxu0 %v3034_v16  ;;  %1783 = vmatprep.subr.mxu1 %v3037_v42  ;;  %v3703_v16 = vld [vmem:[#allocation27_spill] sm:$0xff]  ;;  %v3704_v42 = vld [vmem:[#allocation28_spill] sm:$0xff] }
 0x63f   :  { %1713 = vmatpush1.msra.mxu0 %v3642_v30  ;;  %1784 = vmatpush1.msra.mxu1 %v3643_v31  ;;  %v3708_v31 = vld [vmem:[#allocation57_spill] sm:$0xff] }
 0x640   :  { %1714 = vmatprep.subr.mxu0 %v3046_v46  ;;  %1785 = vmatprep.subr.mxu1 %v3049_v62  ;;  %v3707_v62 = vld [vmem:[#allocation55_spill] sm:$0xff] }
 0x641   :  { %1715 = vmatpush1.msra.mxu0 %v3052_v0  ;;  %1786 = vmatpush1.msra.mxu1 %v3055_v6 }
 0x642   :  { %1716 = vmatprep.subr.mxu0 %v3058_v43  ;;  %1787 = vmatprep.subr.mxu1 %v3061_v45  ;;  %v3705_v43 = vmov 0.0   ;;  %v3706_v45 = vld [vmem:[#allocation29_spill] sm:$0xff] }
 0x643   :  { %1717 = vmatpush1.msra.mxu0 %v3138_v32  ;;  %1788 = vmatpush1.msra.mxu1 %v3141_v33 }
 0x644   :  { %1718 = vmatprep.subr.mxu0 %v3144_v34  ;;  %1789 = vmatprep.subr.mxu1 %v3147_v36 }
 0x645   :  { %1719 = vmatpush1.msra.mxu0 %v3150_v37  ;;  %1790 = vmatpush1.msra.mxu1 %v3153_v39  ;;  %v3709_v37 = vld [vmem:[#allocation58_spill] sm:$0xff] }
 0x646   :  { %1720 = vmatprep.subr.mxu0 %v3156_v17  ;;  %1791 = vmatprep.subr.mxu1 %v3159_v47  ;;  %v3710_v17 = vld [vmem:[#allocation56_spill] sm:$0xff] }
 0x647   :  { %1721 = vmatpush1.msra.mxu0 %v3162_v48  ;;  %1792 = vmatpush1.msra.mxu1 %v3165_v49 }
 0x648   :  { %1722 = vmatprep.subr.mxu0 %v3168_v50  ;;  %1793 = vmatprep.subr.mxu1 %v3171_v51 }
 0x649   :  { %1723 = vmatpush1.msra.mxu0 %v3174_v52  ;;  %1794 = vmatpush1.msra.mxu1 %v3177_v54 }
 0x64a   :  { %1724 = vmatprep.subr.mxu0 %v3180_v55  ;;  %1795 = vmatprep.subr.mxu1 %v3183_v56 }
 0x64b   :  { %1725 = vmatpush1.msra.mxu0 %v3186_v57  ;;  %1796 = vmatpush1.msra.mxu1 %v3189_v58 }
 0x64c   :  { %1726 = vmatprep.subr.mxu0 %v3192_v59  ;;  %1797 = vmatprep.subr.mxu1 %v3195_v60 }
 0x64d   :  { %1727 = vmatpush1.msra.mxu0 %v3198_v61  ;;  %1798 = vmatpush1.msra.mxu1 %v3689_v53 }
 0x64e   :  { %1728 = vmatprep.subr.mxu0 %v3690_v11  ;;  %1799 = vmatprep.subr.mxu1 %v3691_v10  ;;  %v3711_v11 = vld [vmem:[#allocation59_spill] sm:$0xff] }
 0x64f   :  { %1729 = vmatpush1.msra.mxu0 %v3692_v15  ;;  %1800 = vmatpush1.msra.mxu1 %v3693_v5 }
 0x650   :  { %1730 = vmatprep.subr.mxu0 %v3694_v8  ;;  %1801 = vmatprep.subr.mxu1 %v3695_v9  ;;  %v3712_v8 = vld [vmem:[#allocation61_spill] sm:$0xff] }
 0x651   :  { %1731 = vmatpush1.msra.mxu0 %v3696_v13  ;;  %1802 = vmatpush1.msra.mxu1 %v3697_v7 }
 0x652   :  { %1732 = vmatprep.subr.mxu0 %v3698_v4  ;;  %1803 = vmatprep.subr.mxu1 %v3699_v12  ;;  %v3713_v12 = vld [vmem:[#allocation62_spill] sm:$0xff] }
 0x653   :  { %1733 = vmatpush1.msra.mxu0 %v3700_v19  ;;  %1804 = vmatpush1.msra.mxu1 %v3701_v18  ;;  %v3714_v18 = vld [vmem:[#allocation60_spill] sm:$0xff] }
 0x654   :  { %1734 = vmatprep.subr.mxu0 %v3702_v26  ;;  %1805 = vmatprep.subr.mxu1 %v3703_v16 }
 0x655   :  { %1735 = vmatpush1.msra.mxu0 %v3704_v42  ;;  %1768 = vmatprep.mubr.f32.mxu0 %v3705_v43 }
 0x656   :  { %1806 = vmatpush1.msra.mxu1 %v3706_v45  ;;  %1839 = vmatprep.mubr.f32.mxu1 %v3705_v43 }
 0x657   :  { %2049 = vmatprep.subr.mxu0 %v3705_v43 }
 0x6f6   :  { %v1593_v46 = vpop.f32.mrf.mxu0  ;;  %v1664_v33 = vpop.f32.mrf.mxu1 }
 0x6f7   :  { %v1669_v0 = vadd.f32 %v1593_v46, %v3707_v62  ;;  %v1671_v47 = vadd.f32 %v1664_v33, %v3710_v17  ;;  %v2031_v17 = vld [vmem:[%s3443_s5] ss:$0 sm:$0xff] }
 0x6f8   :  { %v1595_v6 = vpop.f32.mrf.mxu0  ;;  %v1666_v36 = vpop.f32.mrf.mxu1 }
 0x6f9   :  { %v2025_v30 = vmul.f32 -1.442695, %v1669_v0  ;;  %v1670_v32 = vadd.f32 %v1595_v6, %v3708_v31  ;;  %v1672_v39 = vadd.f32 %v1666_v36, %v3709_v37 }
 0x6fb   :  { %2190 = vpow2.f32 %v2025_v30  ;;  %v2026_v34 = vmul.f32 -1.442695, %v1670_v32  ;;  %v2027_v48 = vmul.f32 -1.442695, %v1672_v39 }
 0x6fd   :  { %2192 = vpow2.f32 %v2026_v34 }
 0x6fe   :  { %2194 = vtanh.f32 %v1671_v47 }
 0x6ff   :  { %2196 = vpow2.f32 %v2027_v48 }
 0x708   :  { %v2191_v49 = vpop.eup %2190 }
 0x709   :  { %v1676_v50 = vadd.f32 1.0, %v2191_v49 }
 0x70a   :  { %v2193_v51 = vpop.eup %2192 }
 0x70b   :  { %2198 = vrcp.f32 %v1676_v50  ;;  %v1682_v52 = vadd.f32 1.0, %v2193_v51  ;;  %v2195_v54 = vpop.eup %2194 }
 0x70c   :  { %v2197_v55 = vpop.eup %2196 }
 0x70d   :  { %2200 = vrcp.f32 %v1682_v52  ;;  %v1689_v59 = vadd.f32 1.0, %v2197_v55 }
 0x70f   :  { %2202 = vrcp.f32 %v1689_v59 }
 0x718   :  { %v2199_v56 = vpop.eup %2198 }
 0x719   :  { %v1693_v57 = vmul.f32 %v2199_v56, %v2195_v54 }
 0x71a   :  { %v2201_v58 = vpop.eup %2200 }
 0x71b   :  { %v1692_v60 = vmul.f32 %v2201_v58, %v3335_v1  ;;  %v1877_v1 = vld [vmem:[#allocation8 + $0x18] sm:$0xff] }
 0x71c   :  { %v2203_v3 = vpop.eup %2202 }
 0x71d   :  { %v3408_v61 = vadd.f32 %v1693_v57, %v1692_v60 }
 0x71f   :  { %2204 = vtanh.f32 %v3408_v61 }
 0x72c   :  { %v2205_v41 = vpop.eup %2204 }
 0x72d   :  { %v1696_v25 = vmul.f32 %v2205_v41, %v2203_v3 }
 0x72f   :  { %1769 = vmatmul.mubr.f32.vlgmr.msra.gmra.mxu0 %v1696_v25  ;;  %1840 = vmatmul.mubr.f32.vlgmr.msra.gmra.mxu1 %v1696_v25 }
 0x730   :  { %2050 = vmatpush3.msra.mxu0 %v1889_v38  ;;  %2081 = vmatprep.mubr.msk.f32.mxu0 %vm2380_vm1, %v3705_v43 }
 0x731   :  { %2051 = vmatprep.subr.mxu0 %v3705_v43 }
 0x732   :  { %2052 = vmatpush3.msra.mxu0 %v1888_v2 }
 0x733   :  { %2053 = vmatprep.subr.mxu0 %v3705_v43 }
 0x734   :  { %2054 = vmatpush3.msra.mxu0 %v1887_v24 }
 0x735   :  { %2055 = vmatprep.subr.mxu0 %v3705_v43 }
 0x736   :  { %2056 = vmatpush3.msra.mxu0 %v1886_v20 }
 0x737   :  { %2057 = vmatprep.subr.mxu0 %v3705_v43 }
 0x738   :  { %2058 = vmatpush3.msra.mxu0 %v1885_v21 }
 0x739   :  { %2059 = vmatprep.subr.mxu0 %v3705_v43 }
 0x73a   :  { %2060 = vmatpush3.msra.mxu0 %v1884_v27 }
 0x73b   :  { %2061 = vmatprep.subr.mxu0 %v3705_v43 }
 0x73c   :  { %2062 = vmatpush3.msra.mxu0 %v1883_v28 }
 0x73d   :  { %2063 = vmatprep.subr.mxu0 %v3705_v43 }
 0x73e   :  { %2064 = vmatpush3.msra.mxu0 %v1882_v23 }
 0x73f   :  { %2065 = vmatprep.subr.mxu0 %v3705_v43 }
 0x740   :  { %2066 = vmatpush3.msra.mxu0 %v1881_v44 }
 0x741   :  { %2067 = vmatprep.subr.mxu0 %v3705_v43 }
 0x742   :  { %2068 = vmatpush3.msra.mxu0 %v1880_v22 }
 0x743   :  { %2069 = vmatprep.subr.mxu0 %v3705_v43 }
 0x744   :  { %2070 = vmatpush3.msra.mxu0 %v1879_v14 }
 0x745   :  { %2071 = vmatprep.subr.mxu0 %v3705_v43 }
 0x746   :  { %2072 = vmatpush3.msra.mxu0 %v1878_v40 }
 0x747   :  { %2073 = vmatprep.subr.mxu0 %v3705_v43 }
 0x748   :  { %2074 = vmatpush3.msra.mxu0 %v1877_v1 }
 0x749   :  { %2075 = vmatprep.subr.mxu0 %v3705_v43 }
 0x74a   :  { %2076 = vmatpush3.msra.mxu0 %v1876_v63 }
 0x74b   :  { %2077 = vmatprep.subr.mxu0 %v3705_v43 }
 0x74c   :  { %2078 = vmatpush3.msra.mxu0 %v1875_v35 }
 0x74d   :  { %2079 = vmatprep.subr.mxu0 %v3705_v43 }
 0x74e   :  { %2080 = vmatpush3.msra.mxu0 %v1874_v29 }
 0x7ef   :  { %v1770_v53 = vpop.f32.mrf.mxu0  ;;  %v1841_v13 = vpop.f32.mrf.mxu1 }
 0x7f0   :  { %v1846_v10 = vadd.f32 %v1770_v53, %v3711_v11  ;;  %v1848_v26 = vadd.f32 %v1841_v13, %v3714_v18 }
 0x7f1   :  { %v1772_v15 = vpop.f32.mrf.mxu0  ;;  %v1843_v4 = vpop.f32.mrf.mxu1 }
 0x7f2   :  { %v2028_v5 = vmul.f32 -1.442695, %v1846_v10  ;;  %v1847_v9 = vadd.f32 %v1772_v15, %v3712_v8  ;;  %v1849_v19 = vadd.f32 %v1843_v4, %v3713_v12 }
 0x7f4   :  { %2206 = vpow2.f32 %v2028_v5  ;;  %v2029_v7 = vmul.f32 -1.442695, %v1847_v9  ;;  %v2030_v16 = vmul.f32 -1.442695, %v1849_v19 }
 0x7f6   :  { %2208 = vpow2.f32 %v2029_v7 }
 0x7f7   :  { %2210 = vtanh.f32 %v1848_v26 }
 0x7f8   :  { %2212 = vpow2.f32 %v2030_v16 }
 0x801   :  { %v2207_v42 = vpop.eup %2206 }
 0x802   :  { %v1853_v43 = vadd.f32 1.0, %v2207_v42 }
 0x803   :  { %v2209_v45 = vpop.eup %2208 }
 0x804   :  { %2214 = vrcp.f32 %v1853_v43  ;;  %v1859_v46 = vadd.f32 1.0, %v2209_v45  ;;  %v2211_v62 = vpop.eup %2210 }
 0x805   :  { %v2213_v0 = vpop.eup %2212 }
 0x806   :  { %2216 = vrcp.f32 %v1859_v46  ;;  %v1866_v32 = vadd.f32 1.0, %v2213_v0 }
 0x808   :  { %2218 = vrcp.f32 %v1866_v32 }
 0x811   :  { %v2215_v6 = vpop.eup %2214 }
 0x812   :  { %v1870_v30 = vmul.f32 %v2215_v6, %v2211_v62 }
 0x813   :  { %v2217_v31 = vpop.eup %2216 }
 0x814   :  { %v1869_v33 = vmul.f32 %v2217_v31, %v3408_v61 }
 0x815   :  { %v2219_v36 = vpop.eup %2218 }
 0x816   :  { %v1871_v34 = vadd.f32 %v1870_v30, %v1869_v33 }
 0x818   :  { %2220 = vtanh.f32 %v1871_v34 }
 0x825   :  { %v2221_v37 = vpop.eup %2220 }
 0x826   :  { %v1873_v39 = vmul.f32 %v2221_v37, %v2219_v36 }
 0x828   :  { %2082 = vmatmul.mubr.f32.vlgmr.msra.gmra.mxu0 %v1873_v39 }
 0x8e8   :  { %v1963_v47 = vpop.f32.mrf.mxu0 }
 0x8e9   :  { %v1964_v48 = vadd.f32 %v2031_v17, %v1963_v47 }
 0x8ea   :  { %v2083_v49 = vpop.f32.mrf.mxu0 }
 0x8eb   :  { %1967 = vst [vmem:[#allocation9] sm:$0xff] %v1964_v48 }
 0x8ec   :  { %2357 = shalt.err (!%p2354_p5)
}
 0x8ed   :  { %1977 = dma.vmem_to_hbm [thread:$0]  %s1975_s8, 128, %s3444_s6, [#allocation5]  }
 0x8ee   :  { %2370 = dma.done.wait [#allocation5], 128  }
 0x8ef   :  { %2371 = vsyncadd [#allocation5], 4294967168 }
 0x8f0   :  { %1981 = vsyncpa [#allocation4], 1 }
 0x8f1   :  { %1982 = vsyncpa [#allocation7], 1 }
 0x8f2   :  { %1983 = vsyncpa [#allocation5], 1 }

</bundles_post_ra>
